<compile_context>
chip_gen: v6e
topology: v6e:2x2x1
jax: 0.10.0
libtpu: 0.0.40
codegen_flags: <defaults>
</compile_context>

<pallas_src>
import math
import functools

import jax
import jax.numpy as jnp
from jax.experimental import pallas as pl
from jax.experimental.pallas import tpu as pltpu


# ----------------------------- fused kernel --------------------------------

def _fused_kernel(
        # batch inputs
        x_ref, h_ref, geo_ref, g_ref,
        # GRU weights (packed)
        wih_ref, whh_ref, bcomb_ref, bhhn_ref,
        # loc_topic linear
        wlt_ref, blt_ref,
        # region gaussian constants
        mu_ref, c_ref, ibbb_ref,
        # folded r2t attention
        r2t_wr_ref, r2t_c_ref,
        # folded mixed output head
        wmix_ref, bmix_ref,
        # outputs
        out_ref, mloc_ref, hnew_ref,
        # scratch
        cat_ref,
        *, inv_tau):
    x = x_ref[...]                        # (B, Dx)
    h = h_ref[...]                        # (B, 3H) = [h_loc | h_topic | h_mode]
    B = x.shape[0]
    H = hnew_ref.shape[1] // 3
    T = wlt_ref.shape[1]
    R = mu_ref.shape[1]

    # ---- three GRU cells: one shared x@Wih, three block-diag h@Whh --------
    # wih columns are per-cell contiguous [loc: r z n | topic: r z n | mode: r z n]
    gi = jnp.dot(x, wih_ref[...], preferred_element_type=jnp.float32) + bcomb_ref[...]

    h_new_parts = []
    for i in range(3):
        h_i = h[:, i * H:(i + 1) * H]                       # (B, H)
        gi_i = gi[:, i * 3 * H:(i + 1) * 3 * H]             # (B, 3H)
        gh_i = jnp.dot(h_i, whh_ref[i],                     # (B, 3H)
                       preferred_element_type=jnp.float32)
        r = jax.nn.sigmoid(gi_i[:, :H] + gh_i[:, :H])
        z = jax.nn.sigmoid(gi_i[:, H:2 * H] + gh_i[:, H:2 * H])
        n = jnp.tanh(gi_i[:, 2 * H:]
                     + r * (gh_i[:, 2 * H:] + bhhn_ref[:, i * H:(i + 1) * H]))
        h_new_i = (1.0 - z) * n + z * h_i
        hnew_ref[:, i * H:(i + 1) * H] = h_new_i
        h_new_parts.append(h_new_i)
    loc_out, topic_out = h_new_parts[0], h_new_parts[1]
    # mode hidden is returned via hnew_ref; the mode head itself is dead code.

    # ---- loc_topic_layer(topic_output[0]) ---------------------------------
    loc_topic = (jnp.dot(topic_out, wlt_ref[...],
                         preferred_element_type=jnp.float32) + blt_ref[...])

    # ---- region Gaussian "distance" (constants host-precomputed) ----------
    geo = geo_ref[...]                    # (B, 2)
    mu = mu_ref[...]                      # (2, R)
    c = c_ref[...]                        # (2, R) = -0.5 / cov
    d0 = geo[:, 0:1] - mu[0:1, :]
    d1 = geo[:, 1:2] - mu[1:2, :]
    region_dist = (d0 * d0 * c[0:1, :] + d1 * d1 * c[1:2, :]) * ibbb_ref[...]

    # ---- gumbel softmaxes (noise supplied from host, tau folded) ----------
    g = g_ref[...]                        # (B, T + R + R + T)

    def gsoftmax(y):
        y = y - jnp.max(y, axis=-1, keepdims=True)
        e = jnp.exp(y)
        return e / jnp.sum(e, axis=-1, keepdims=True)

    m1_topic_gs = gsoftmax((loc_topic + g[:, :T]) * inv_tau)            # (B, T)

    # m1 / m2 region gumbels share logits -> one softmax over 2B rows
    rd2 = jnp.concatenate([region_dist + g[:, T:T + R],
                           region_dist + g[:, T + R:T + 2 * R]], axis=0)
    rgs2 = gsoftmax(rd2 * inv_tau)                                       # (2B, R)
    m1_region_gs = rgs2[:B]
    m2_region_gs = rgs2[B:]

    # ---- m2 topic dist via folded r2t attention ----------------------------
    part_r = jnp.dot(m2_region_gs, r2t_wr_ref[...],
                     preferred_element_type=jnp.float32)                 # (B, 1)
    m2_topic_dist = part_r + r2t_c_ref[...] + loc_topic                  # (B, T)
    m2_topic_gs = gsoftmax((m2_topic_dist + g[:, T + 2 * R:]) * inv_tau)

    # ---- packed small outputs (one lane-dense writeback) ------------------
    out_ref[:, :R] = m2_region_gs
    out_ref[:, R:R + T] = m2_topic_gs
    out_ref[:, R + T:2 * R + T] = region_dist
    out_ref[:, 2 * R + T:] = m2_topic_dist

    # ---- mixed loc head: single matmul -------------------------------------
    cat_ref[:, :H] = loc_out
    cat_ref[:, H:H + T] = m1_topic_gs
    cat_ref[:, H + T:H + T + R] = m1_region_gs
    cat_ref[:, H + T + R:H + 2 * T + R] = m2_topic_gs
    cat_ref[:, H + 2 * T + R:] = m2_region_gs
    mloc_ref[...] = (jnp.dot(cat_ref[...], wmix_ref[...],
                             preferred_element_type=jnp.float32) + bmix_ref[...])

    # TODO(synk): Categorical(.sample()) draws, the t2r attention /
    # m1_t2r_info / m2_r2t_info branches and the mode-head gumbel sample are
    # dead code w.r.t. the returned tuple and are not reproduced.


def _fused_forward(x, h_all, geo, gnoise, pk, cfg, *, tau=0.1):
    B = x.shape[0]
    H, T, R, L = cfg['hidden'], cfg['topic_num'], cfg['region_num'], cfg['loc_num']

    operands = (x, h_all, geo, gnoise,
                pk['wih_all'], pk['whh_stack'], pk['b_comb'], pk['bhh_n'],
                pk['loc_topic_w'], pk['loc_topic_b'],
                pk['mu_t'], pk['c_half'], pk['inv_bbb'],
                pk['r2t_wr'], pk['r2t_const'],
                pk['w_mix'], pk['b_mix'])

    out_shape = (
        jax.ShapeDtypeStruct((B, 2 * R + 2 * T), jnp.float32),  # packed small outs
        jax.ShapeDtypeStruct((B, L), jnp.float32),              # m_loc_dist
        jax.ShapeDtypeStruct((B, 3 * H), jnp.float32),          # [loc|topic|mode] hidden
    )
    return pl.pallas_call(
        functools.partial(_fused_kernel, inv_tau=float(1.0 / tau)),
        out_shape=out_shape,
        scratch_shapes=[pltpu.VMEM((B, H + 2 * T + 2 * R), jnp.float32)],
    )(*operands)


# ------------------------------- parameters --------------------------------

def init_params(key, cfg):
    Dx = cfg['loc_emb'] + cfg['user_emb'] + cfg['time_emb']
    H, R, T = cfg['hidden'], cfg['region_num'], cfg['topic_num']
    Re, Te, L = cfg['region_emb'], cfg['topic_emb'], cfg['loc_num']

    ks = iter(jax.random.split(key, 40))

    def W(shape, fan_in):
        return (jax.random.normal(next(ks), shape, dtype=jnp.float32)
                / math.sqrt(float(fan_in)))

    def gru(Din):
        # (Wih, Whh, bih, bhh) with columns gate-grouped [r | z | n]
        return (W((Din, 3 * H), Din), W((H, 3 * H), H),
                jnp.zeros((1, 3 * H), jnp.float32),
                jnp.zeros((1, 3 * H), jnp.float32))

    return {
        'loc_emb': W((L, cfg['loc_emb']), cfg['loc_emb']),
        'user_emb': W((cfg['user_num'], cfg['user_emb']), cfg['user_emb']),
        'time_emb': W((cfg['time_num'], cfg['time_emb']), cfg['time_emb']),
        'loc_gru': gru(Dx),
        'topic_gru': gru(Dx),
        'mode_gru': gru(Dx),
        'loc_topic_w': W((H, T), H),
        'loc_topic_b': jnp.zeros((1, T), jnp.float32),
        'gmb_topic_w_t': W((T, Te), T),    # Linear(T, Te, bias=False), pre-transposed
        'gmb_region_w_t': W((R, Re), R),   # Linear(R, Re, bias=False), pre-transposed
        'r2t_attn_w': W((Re + Te, 1), Re + Te),
        'r2t_attn_b': jnp.zeros((1, 1), jnp.float32),
        'm1_out_w': W((2 * Re + Te + H, L), 2 * Re + Te + H),
        'm1_out_b': jnp.zeros((1, L), jnp.float32),
        'm2_out_w': W((Re + Te + H, L), Re + Te + H),
        'm2_out_b': jnp.zeros((1, L), jnp.float32),
        'mu': jax.random.normal(next(ks), (R, 2), dtype=jnp.float32),
        'cov': jnp.abs(jax.random.normal(next(ks), (R, 2), dtype=jnp.float32)) + 0.5,
    }


def pack_params(p, cfg):
    """One-time host packing / folding of module params into kernel operands."""
    H, T, R = cfg['hidden'], cfg['topic_num'], cfg['region_num']
    Re, Te = cfg['region_emb'], cfg['topic_emb']

    # --- GRU packing: per-cell contiguous columns; fold bhh_r/bhh_z into bih
    wih_parts, whh_parts, bcomb_parts, bhhn_parts = [], [], [], []
    for wih, whh, bih, bhh in (p['loc_gru'], p['topic_gru'], p['mode_gru']):
        wih_parts.append(wih)                               # (Dx, 3H)
        whh_parts.append(whh)                               # (H, 3H)
        bcomb_parts.append(jnp.concatenate(
            [bih[:, :2 * H] + bhh[:, :2 * H], bih[:, 2 * H:]], axis=-1))
        bhhn_parts.append(bhh[:, 2 * H:])                   # (1, H)
    wih_all = jnp.concatenate(wih_parts, axis=-1)           # (Dx, 9H)
    whh_stack = jnp.stack(whh_parts, axis=0)                # (3, H, 3H) block-diag blocks
    b_comb = jnp.concatenate(bcomb_parts, axis=-1)          # (1, 9H)
    bhh_n = jnp.concatenate(bhhn_parts, axis=-1)            # (1, 3H)

    # --- region Gaussian constants (no divides / sqrt in kernel)
    mu_t = p['mu'].T                                        # (2, R)
    cov_t = p['cov'].T                                      # (2, R)
    c_half = -0.5 / cov_t                                   # (2, R)
    inv_bbb = 1.0 / (2.0 * math.pi * jnp.sqrt(cov_t[0:1] * cov_t[1:2]))  # (1, R)

    # --- r2t attention folds
    wt = p['gmb_topic_w_t']                                 # (T, Te) topic table
    wr = p['gmb_region_w_t']                                # (R, Re) region table
    a_r = p['r2t_attn_w'][:Re, :]                           # (Re, 1)
    a_t = p['r2t_attn_w'][Re:, :]                           # (Te, 1)
    r2t_wr = jnp.dot(wr, a_r)                               # (R, 1)
    r2t_const = jnp.dot(wt, a_t).T + p['r2t_attn_b']        # (1, T)

    # --- mixed output head: 0.5*(m1 + m2), gumbel-emb layers folded in,
    #     single concatenated weight in [loc | m1_t | m1_r | m2_t | m2_r] order
    W1, b1 = p['m1_out_w'], p['m1_out_b']   # rows: [loc H | m1_t Te | m1_r Re | m1_t Te]
    W2, b2 = p['m2_out_w'], p['m2_out_b']   # rows: [loc H | m2_t Te | m2_r Re]
    w_loc = 0.5 * (W1[:H] + W2[:H])
    w_m1t = jnp.dot(wt, 0.5 * (W1[H:H + Te] + W1[H + Te + Re:H + 2 * Te + Re]))
    w_m1r = jnp.dot(wr, 0.5 * W1[H + Te:H + Te + Re])
    w_m2t = jnp.dot(wt, 0.5 * W2[H:H + Te])
    w_m2r = jnp.dot(wr, 0.5 * W2[H + Te:H + Te + Re])
    w_mix = jnp.concatenate([w_loc, w_m1t, w_m1r, w_m2t, w_m2r], axis=0)  # (H+2T+2R, L)
    b_mix = 0.5 * (b1 + b2)

    return {
        'loc_emb': p['loc_emb'], 'user_emb': p['user_emb'], 'time_emb': p['time_emb'],
        'wih_all': wih_all, 'whh_stack': whh_stack, 'b_comb': b_comb, 'bhh_n': bhh_n,
        'loc_topic_w': p['loc_topic_w'], 'loc_topic_b': p['loc_topic_b'],
        'mu_t': mu_t, 'c_half': c_half, 'inv_bbb': inv_bbb,
        'r2t_wr': r2t_wr, 'r2t_const': r2t_const,
        'w_mix': w_mix, 'b_mix': b_mix,
    }


# -------------------------------- forward ----------------------------------

def multi_mode_forward(packed, pretrain, topic_batch, geo_token_batch, geo_batch,
                       loc_batch, user_batch, time_batch,
                       loc_hidden, topic_hidden, mode_hidden, rng, *, cfg, tau=0.1):
    # pretrain / geo_token_batch / topic_batch embedding do not influence the
    # returned tuple in the reference forward either.
    del pretrain, geo_token_batch, topic_batch
    H, T, R = cfg['hidden'], cfg['topic_num'], cfg['region_num']

    loc_e = jnp.take(packed['loc_emb'], loc_batch, axis=0)
    user_e = jnp.take(packed['user_emb'], user_batch, axis=0)
    time_e = jnp.take(packed['time_emb'], time_batch, axis=0)
    x = jnp.concatenate([loc_e, user_e, time_e], axis=-1).astype(jnp.float32)
    h_all = jnp.concatenate([loc_hidden[0], topic_hidden[0], mode_hidden[0]],
                            axis=-1).astype(jnp.float32)
    B = x.shape[0]

    # Host-drawn Gumbel(0,1) noise, packed [m1_topic | m1_region | m2_region | m2_topic].
    # (RNG stream differs from torch; distribution is identical.)
    gnoise = jax.random.gumbel(rng, (B, 2 * T + 2 * R), dtype=jnp.float32)

    packed_out, m_loc_dist, h_new = _fused_forward(
        x, h_all, geo_batch.astype(jnp.float32), gnoise, packed, cfg, tau=tau)

    m2_region_gs = packed_out[:, :R]
    m2_topic_gs = packed_out[:, R:R + T]
    m2_region_dist = packed_out[:, R + T:2 * R + T]
    m2_topic_dist = packed_out[:, 2 * R + T:]

    loc_hidden_new = h_new[:, :H][None]
    topic_hidden_new = h_new[:, H:2 * H][None]
    mode_hidden_new = h_new[:, 2 * H:][None]
    return (m2_region_gs, m2_topic_gs, m2_region_dist, m2_topic_dist,
            m_loc_dist, loc_hidden_new, topic_hidden_new, mode_hidden_new)


# --------------------------------- main -------------------------------------

if __name__ == "__main__":
    cfg = dict(batch=8, region_num=32, topic_num=32, loc_num=256,
               user_num=16, time_num=24,
               loc_emb=128, user_emb=64, time_emb=32,
               region_emb=32, topic_emb=32, hidden=128)

    key = jax.random.PRNGKey(0)
    pkey, dkey, rngkey = jax.random.split(key, 3)
    raw_params = init_params(pkey, cfg)
    packed = pack_params(raw_params, cfg)

    B = cfg['batch']
    k_loc, k_user, k_time, k_topic, k_geo = jax.random.split(dkey, 5)
    loc_batch = jax.random.randint(k_loc, (B,), 0, cfg['loc_num'])
    user_batch = jax.random.randint(k_user, (B,), 0, cfg['user_num'])
    time_batch = jax.random.randint(k_time, (B,), 0, cfg['time_num'])
    topic_batch = jax.random.randint(k_topic, (B,), 0, cfg['topic_num'])
    geo_batch = jax.random.normal(k_geo, (B, 2), dtype=jnp.float32)
    geo_token_batch = jnp.zeros((B,), jnp.int32)      # unused by forward
    loc_hidden = jnp.zeros((1, B, cfg['hidden']), jnp.float32)
    topic_hidden = jnp.zeros((1, B, cfg['hidden']), jnp.float32)
    mode_hidden = jnp.zeros((1, B, cfg['hidden']), jnp.float32)

    fwd = jax.jit(functools.partial(multi_mode_forward, cfg=cfg))
    outs = fwd(packed, False, topic_batch, geo_token_batch, geo_batch,
               loc_batch, user_batch, time_batch,
               loc_hidden, topic_hidden, mode_hidden, rngkey)
    jax.block_until_ready(outs)
    print("KERNEL_OK")
</pallas_src>

<mosaic_0001>
module attributes {stable_mosaic.version = 11 : i64} {
  func.func @_fused_kernel(%arg0: memref<8x224xf32, #tpu.memory_space<vmem>>, %arg1: memref<8x384xf32, #tpu.memory_space<vmem>>, %arg2: memref<8x2xf32, #tpu.memory_space<vmem>>, %arg3: memref<8x128xf32, #tpu.memory_space<vmem>>, %arg4: memref<224x1152xf32, #tpu.memory_space<vmem>>, %arg5: memref<3x128x384xf32, #tpu.memory_space<vmem>>, %arg6: memref<1x1152xf32, #tpu.memory_space<vmem>>, %arg7: memref<1x384xf32, #tpu.memory_space<vmem>>, %arg8: memref<128x32xf32, #tpu.memory_space<vmem>>, %arg9: memref<1x32xf32, #tpu.memory_space<vmem>>, %arg10: memref<2x32xf32, #tpu.memory_space<vmem>>, %arg11: memref<2x32xf32, #tpu.memory_space<vmem>>, %arg12: memref<1x32xf32, #tpu.memory_space<vmem>>, %arg13: memref<32x1xf32, #tpu.memory_space<vmem>>, %arg14: memref<1x32xf32, #tpu.memory_space<vmem>>, %arg15: memref<256x256xf32, #tpu.memory_space<vmem>>, %arg16: memref<1x256xf32, #tpu.memory_space<vmem>>, %arg17: memref<8x128xf32, #tpu.memory_space<vmem>>, %arg18: memref<8x256xf32, #tpu.memory_space<vmem>>, %arg19: memref<8x384xf32, #tpu.memory_space<vmem>>, %arg20: memref<8x256xf32, #tpu.memory_space<vmem>>) attributes {dimension_semantics = [], scalar_prefetch = 0 : i64, scratch_operands = 1 : i64, tpu.core_type = #tpu.core_type<tc>} {
    %c0 = arith.constant 0 : index
    %c0_0 = arith.constant 0 : index
    %0 = vector.load %arg0[%c0, %c0_0] : memref<8x224xf32, #tpu.memory_space<vmem>>, vector<8x224xf32>
    %c0_1 = arith.constant 0 : index
    %c0_2 = arith.constant 0 : index
    %1 = vector.load %arg1[%c0_1, %c0_2] : memref<8x384xf32, #tpu.memory_space<vmem>>, vector<8x384xf32>
    %c0_3 = arith.constant 0 : index
    %c0_4 = arith.constant 0 : index
    %2 = vector.load %arg4[%c0_3, %c0_4] : memref<224x1152xf32, #tpu.memory_space<vmem>>, vector<224x1152xf32>
    %cst = arith.constant dense<0.000000e+00> : vector<8x1152xf32>
    %3 = tpu.matmul %0, %2, %cst {dimension_numbers = #tpu.dot_dimension_numbers<[1], [0], [0], [1], [0, 0, 1, 1], [], []>} : vector<8x224xf32>, vector<224x1152xf32>, vector<8x1152xf32> -> vector<8x1152xf32>
    %c0_5 = arith.constant 0 : index
    %c0_6 = arith.constant 0 : index
    %4 = vector.load %arg6[%c0_5, %c0_6] : memref<1x1152xf32, #tpu.memory_space<vmem>>, vector<1x1152xf32>
    %5 = vector.broadcast %4 : vector<1x1152xf32> to vector<8x1152xf32>
    %6 = arith.addf %3, %5 : vector<8x1152xf32>
    %7 = vector.extract_strided_slice %1 {offsets = [0, 0], sizes = [8, 128], strides = [1, 1]} : vector<8x384xf32> to vector<8x128xf32>
    %8 = vector.extract_strided_slice %6 {offsets = [0, 0], sizes = [8, 384], strides = [1, 1]} : vector<8x1152xf32> to vector<8x384xf32>
    %c0_7 = arith.constant 0 : index
    %c0_8 = arith.constant 0 : index
    %c0_9 = arith.constant 0 : index
    %9 = vector.load %arg5[%c0_7, %c0_8, %c0_9] : memref<3x128x384xf32, #tpu.memory_space<vmem>>, vector<1x128x384xf32>
    %10 = vector.shape_cast %9 : vector<1x128x384xf32> to vector<128x384xf32>
    %cst_10 = arith.constant dense<0.000000e+00> : vector<8x384xf32>
    %11 = tpu.matmul %7, %10, %cst_10 {dimension_numbers = #tpu.dot_dimension_numbers<[1], [0], [0], [1], [0, 0, 1, 1], [], []>} : vector<8x128xf32>, vector<128x384xf32>, vector<8x384xf32> -> vector<8x384xf32>
    %12 = vector.extract_strided_slice %8 {offsets = [0, 0], sizes = [8, 128], strides = [1, 1]} : vector<8x384xf32> to vector<8x128xf32>
    %13 = vector.extract_strided_slice %11 {offsets = [0, 0], sizes = [8, 128], strides = [1, 1]} : vector<8x384xf32> to vector<8x128xf32>
    %14 = arith.addf %12, %13 : vector<8x128xf32>
    %15 = arith.negf %14 : vector<8x128xf32>
    %16 = math.exp %15 : vector<8x128xf32>
    %cst_11 = arith.constant 1.000000e+00 : f32
    %17 = vector.broadcast %cst_11 : f32 to vector<8x128xf32>
    %18 = arith.addf %17, %16 : vector<8x128xf32>
    %19 = arith.divf %17, %18 : vector<8x128xf32>
    %20 = vector.extract_strided_slice %8 {offsets = [0, 128], sizes = [8, 128], strides = [1, 1]} : vector<8x384xf32> to vector<8x128xf32>
    %21 = vector.extract_strided_slice %11 {offsets = [0, 128], sizes = [8, 128], strides = [1, 1]} : vector<8x384xf32> to vector<8x128xf32>
    %22 = arith.addf %20, %21 : vector<8x128xf32>
    %23 = arith.negf %22 : vector<8x128xf32>
    %24 = math.exp %23 : vector<8x128xf32>
    %cst_12 = arith.constant 1.000000e+00 : f32
    %25 = vector.broadcast %cst_12 : f32 to vector<8x128xf32>
    %26 = arith.addf %25, %24 : vector<8x128xf32>
    %27 = arith.divf %25, %26 : vector<8x128xf32>
    %28 = vector.extract_strided_slice %8 {offsets = [0, 256], sizes = [8, 128], strides = [1, 1]} : vector<8x384xf32> to vector<8x128xf32>
    %29 = vector.extract_strided_slice %11 {offsets = [0, 256], sizes = [8, 128], strides = [1, 1]} : vector<8x384xf32> to vector<8x128xf32>
    %c0_13 = arith.constant 0 : index
    %c0_14 = arith.constant 0 : index
    %30 = vector.load %arg7[%c0_13, %c0_14] : memref<1x384xf32, #tpu.memory_space<vmem>>, vector<1x128xf32>
    %31 = vector.broadcast %30 : vector<1x128xf32> to vector<8x128xf32>
    %32 = arith.addf %29, %31 : vector<8x128xf32>
    %33 = arith.mulf %19, %32 : vector<8x128xf32>
    %34 = arith.addf %28, %33 : vector<8x128xf32>
    %35 = math.tanh %34 : vector<8x128xf32>
    %cst_15 = arith.constant 1.000000e+00 : f32
    %36 = vector.broadcast %cst_15 : f32 to vector<8x128xf32>
    %37 = arith.subf %36, %27 : vector<8x128xf32>
    %38 = arith.mulf %37, %35 : vector<8x128xf32>
    %39 = arith.mulf %27, %7 : vector<8x128xf32>
    %40 = arith.addf %38, %39 : vector<8x128xf32>
    %c0_16 = arith.constant 0 : index
    %c0_17 = arith.constant 0 : index
    %41 = vector.load %arg19[%c0_16, %c0_17] : memref<8x384xf32, #tpu.memory_space<vmem>>, vector<8x128xf32>
    tpu.vector_store %arg19[%c0_16, %c0_17], %40 {strides = array<i32>} : memref<8x384xf32, #tpu.memory_space<vmem>>, vector<8x128xf32>,
    %42 = vector.extract_strided_slice %1 {offsets = [0, 128], sizes = [8, 128], strides = [1, 1]} : vector<8x384xf32> to vector<8x128xf32>
    %43 = vector.extract_strided_slice %6 {offsets = [0, 384], sizes = [8, 384], strides = [1, 1]} : vector<8x1152xf32> to vector<8x384xf32>
    %c1 = arith.constant 1 : index
    %c0_18 = arith.constant 0 : index
    %c0_19 = arith.constant 0 : index
    %44 = vector.load %arg5[%c1, %c0_18, %c0_19] : memref<3x128x384xf32, #tpu.memory_space<vmem>>, vector<1x128x384xf32>
    %45 = vector.shape_cast %44 : vector<1x128x384xf32> to vector<128x384xf32>
    %cst_20 = arith.constant dense<0.000000e+00> : vector<8x384xf32>
    %46 = tpu.matmul %42, %45, %cst_20 {dimension_numbers = #tpu.dot_dimension_numbers<[1], [0], [0], [1], [0, 0, 1, 1], [], []>} : vector<8x128xf32>, vector<128x384xf32>, vector<8x384xf32> -> vector<8x384xf32>
    %47 = vector.extract_strided_slice %43 {offsets = [0, 0], sizes = [8, 128], strides = [1, 1]} : vector<8x384xf32> to vector<8x128xf32>
    %48 = vector.extract_strided_slice %46 {offsets = [0, 0], sizes = [8, 128], strides = [1, 1]} : vector<8x384xf32> to vector<8x128xf32>
    %49 = arith.addf %47, %48 : vector<8x128xf32>
    %50 = arith.negf %49 : vector<8x128xf32>
    %51 = math.exp %50 : vector<8x128xf32>
    %cst_21 = arith.constant 1.000000e+00 : f32
    %52 = vector.broadcast %cst_21 : f32 to vector<8x128xf32>
    %53 = arith.addf %52, %51 : vector<8x128xf32>
    %54 = arith.divf %52, %53 : vector<8x128xf32>
    %55 = vector.extract_strided_slice %43 {offsets = [0, 128], sizes = [8, 128], strides = [1, 1]} : vector<8x384xf32> to vector<8x128xf32>
    %56 = vector.extract_strided_slice %46 {offsets = [0, 128], sizes = [8, 128], strides = [1, 1]} : vector<8x384xf32> to vector<8x128xf32>
    %57 = arith.addf %55, %56 : vector<8x128xf32>
    %58 = arith.negf %57 : vector<8x128xf32>
    %59 = math.exp %58 : vector<8x128xf32>
    %cst_22 = arith.constant 1.000000e+00 : f32
    %60 = vector.broadcast %cst_22 : f32 to vector<8x128xf32>
    %61 = arith.addf %60, %59 : vector<8x128xf32>
    %62 = arith.divf %60, %61 : vector<8x128xf32>
    %63 = vector.extract_strided_slice %43 {offsets = [0, 256], sizes = [8, 128], strides = [1, 1]} : vector<8x384xf32> to vector<8x128xf32>
    %64 = vector.extract_strided_slice %46 {offsets = [0, 256], sizes = [8, 128], strides = [1, 1]} : vector<8x384xf32> to vector<8x128xf32>
    %c0_23 = arith.constant 0 : index
    %c128 = arith.constant 128 : index
    %65 = vector.load %arg7[%c0_23, %c128] : memref<1x384xf32, #tpu.memory_space<vmem>>, vector<1x128xf32>
    %66 = vector.broadcast %65 : vector<1x128xf32> to vector<8x128xf32>
    %67 = arith.addf %64, %66 : vector<8x128xf32>
    %68 = arith.mulf %54, %67 : vector<8x128xf32>
    %69 = arith.addf %63, %68 : vector<8x128xf32>
    %70 = math.tanh %69 : vector<8x128xf32>
    %cst_24 = arith.constant 1.000000e+00 : f32
    %71 = vector.broadcast %cst_24 : f32 to vector<8x128xf32>
    %72 = arith.subf %71, %62 : vector<8x128xf32>
    %73 = arith.mulf %72, %70 : vector<8x128xf32>
    %74 = arith.mulf %62, %42 : vector<8x128xf32>
    %75 = arith.addf %73, %74 : vector<8x128xf32>
    %c0_25 = arith.constant 0 : index
    %c128_26 = arith.constant 128 : index
    %76 = vector.load %arg19[%c0_25, %c128_26] : memref<8x384xf32, #tpu.memory_space<vmem>>, vector<8x128xf32>
    tpu.vector_store %arg19[%c0_25, %c128_26], %75 {strides = array<i32>} : memref<8x384xf32, #tpu.memory_space<vmem>>, vector<8x128xf32>,
    %77 = vector.extract_strided_slice %1 {offsets = [0, 256], sizes = [8, 128], strides = [1, 1]} : vector<8x384xf32> to vector<8x128xf32>
    %78 = vector.extract_strided_slice %6 {offsets = [0, 768], sizes = [8, 384], strides = [1, 1]} : vector<8x1152xf32> to vector<8x384xf32>
    %c2 = arith.constant 2 : index
    %c0_27 = arith.constant 0 : index
    %c0_28 = arith.constant 0 : index
    %79 = vector.load %arg5[%c2, %c0_27, %c0_28] : memref<3x128x384xf32, #tpu.memory_space<vmem>>, vector<1x128x384xf32>
    %80 = vector.shape_cast %79 : vector<1x128x384xf32> to vector<128x384xf32>
    %cst_29 = arith.constant dense<0.000000e+00> : vector<8x384xf32>
    %81 = tpu.matmul %77, %80, %cst_29 {dimension_numbers = #tpu.dot_dimension_numbers<[1], [0], [0], [1], [0, 0, 1, 1], [], []>} : vector<8x128xf32>, vector<128x384xf32>, vector<8x384xf32> -> vector<8x384xf32>
    %82 = vector.extract_strided_slice %78 {offsets = [0, 0], sizes = [8, 128], strides = [1, 1]} : vector<8x384xf32> to vector<8x128xf32>
    %83 = vector.extract_strided_slice %81 {offsets = [0, 0], sizes = [8, 128], strides = [1, 1]} : vector<8x384xf32> to vector<8x128xf32>
    %84 = arith.addf %82, %83 : vector<8x128xf32>
    %85 = arith.negf %84 : vector<8x128xf32>
    %86 = math.exp %85 : vector<8x128xf32>
    %cst_30 = arith.constant 1.000000e+00 : f32
    %87 = vector.broadcast %cst_30 : f32 to vector<8x128xf32>
    %88 = arith.addf %87, %86 : vector<8x128xf32>
    %89 = arith.divf %87, %88 : vector<8x128xf32>
    %90 = vector.extract_strided_slice %78 {offsets = [0, 128], sizes = [8, 128], strides = [1, 1]} : vector<8x384xf32> to vector<8x128xf32>
    %91 = vector.extract_strided_slice %81 {offsets = [0, 128], sizes = [8, 128], strides = [1, 1]} : vector<8x384xf32> to vector<8x128xf32>
    %92 = arith.addf %90, %91 : vector<8x128xf32>
    %93 = arith.negf %92 : vector<8x128xf32>
    %94 = math.exp %93 : vector<8x128xf32>
    %cst_31 = arith.constant 1.000000e+00 : f32
    %95 = vector.broadcast %cst_31 : f32 to vector<8x128xf32>
    %96 = arith.addf %95, %94 : vector<8x128xf32>
    %97 = arith.divf %95, %96 : vector<8x128xf32>
    %98 = vector.extract_strided_slice %78 {offsets = [0, 256], sizes = [8, 128], strides = [1, 1]} : vector<8x384xf32> to vector<8x128xf32>
    %99 = vector.extract_strided_slice %81 {offsets = [0, 256], sizes = [8, 128], strides = [1, 1]} : vector<8x384xf32> to vector<8x128xf32>
    %c0_32 = arith.constant 0 : index
    %c256 = arith.constant 256 : index
    %100 = vector.load %arg7[%c0_32, %c256] : memref<1x384xf32, #tpu.memory_space<vmem>>, vector<1x128xf32>
    %101 = vector.broadcast %100 : vector<1x128xf32> to vector<8x128xf32>
    %102 = arith.addf %99, %101 : vector<8x128xf32>
    %103 = arith.mulf %89, %102 : vector<8x128xf32>
    %104 = arith.addf %98, %103 : vector<8x128xf32>
    %105 = math.tanh %104 : vector<8x128xf32>
    %cst_33 = arith.constant 1.000000e+00 : f32
    %106 = vector.broadcast %cst_33 : f32 to vector<8x128xf32>
    %107 = arith.subf %106, %97 : vector<8x128xf32>
    %108 = arith.mulf %107, %105 : vector<8x128xf32>
    %109 = arith.mulf %97, %77 : vector<8x128xf32>
    %110 = arith.addf %108, %109 : vector<8x128xf32>
    %c0_34 = arith.constant 0 : index
    %c256_35 = arith.constant 256 : index
    %111 = vector.load %arg19[%c0_34, %c256_35] : memref<8x384xf32, #tpu.memory_space<vmem>>, vector<8x128xf32>
    tpu.vector_store %arg19[%c0_34, %c256_35], %110 {strides = array<i32>} : memref<8x384xf32, #tpu.memory_space<vmem>>, vector<8x128xf32>,
    %c0_36 = arith.constant 0 : index
    %c0_37 = arith.constant 0 : index
    %112 = vector.load %arg8[%c0_36, %c0_37] : memref<128x32xf32, #tpu.memory_space<vmem>>, vector<128x32xf32>
    %cst_38 = arith.constant dense<0.000000e+00> : vector<8x32xf32>
    %113 = tpu.matmul %75, %112, %cst_38 {dimension_numbers = #tpu.dot_dimension_numbers<[1], [0], [0], [1], [0, 0, 1, 1], [], []>} : vector<8x128xf32>, vector<128x32xf32>, vector<8x32xf32> -> vector<8x32xf32>
    %c0_39 = arith.constant 0 : index
    %c0_40 = arith.constant 0 : index
    %114 = vector.load %arg9[%c0_39, %c0_40] : memref<1x32xf32, #tpu.memory_space<vmem>>, vector<1x32xf32>
    %115 = vector.broadcast %114 : vector<1x32xf32> to vector<8x32xf32>
    %116 = arith.addf %113, %115 : vector<8x32xf32>
    %c0_41 = arith.constant 0 : index
    %c0_42 = arith.constant 0 : index
    %117 = vector.load %arg2[%c0_41, %c0_42] : memref<8x2xf32, #tpu.memory_space<vmem>>, vector<8x2xf32>
    %c0_43 = arith.constant 0 : index
    %c0_44 = arith.constant 0 : index
    %118 = vector.load %arg10[%c0_43, %c0_44] : memref<2x32xf32, #tpu.memory_space<vmem>>, vector<2x32xf32>
    %c0_45 = arith.constant 0 : index
    %c0_46 = arith.constant 0 : index
    %119 = vector.load %arg11[%c0_45, %c0_46] : memref<2x32xf32, #tpu.memory_space<vmem>>, vector<2x32xf32>
    %120 = vector.extract_strided_slice %117 {offsets = [0, 0], sizes = [8, 1], strides = [1, 1]} : vector<8x2xf32> to vector<8x1xf32>
    %121 = vector.extract_strided_slice %118 {offsets = [0, 0], sizes = [1, 32], strides = [1, 1]} : vector<2x32xf32> to vector<1x32xf32>
    %122 = vector.broadcast %120 : vector<8x1xf32> to vector<8x32xf32>
    %123 = vector.broadcast %121 : vector<1x32xf32> to vector<8x32xf32>
    %124 = arith.subf %122, %123 : vector<8x32xf32>
    %125 = vector.extract_strided_slice %117 {offsets = [0, 1], sizes = [8, 1], strides = [1, 1]} : vector<8x2xf32> to vector<8x1xf32>
    %126 = vector.extract_strided_slice %118 {offsets = [1, 0], sizes = [1, 32], strides = [1, 1]} : vector<2x32xf32> to vector<1x32xf32>
    %127 = vector.broadcast %125 : vector<8x1xf32> to vector<8x32xf32>
    %128 = vector.broadcast %126 : vector<1x32xf32> to vector<8x32xf32>
    %129 = arith.subf %127, %128 : vector<8x32xf32>
    %130 = arith.mulf %124, %124 : vector<8x32xf32>
    %131 = vector.extract_strided_slice %119 {offsets = [0, 0], sizes = [1, 32], strides = [1, 1]} : vector<2x32xf32> to vector<1x32xf32>
    %132 = vector.broadcast %131 : vector<1x32xf32> to vector<8x32xf32>
    %133 = arith.mulf %130, %132 : vector<8x32xf32>
    %134 = arith.mulf %129, %129 : vector<8x32xf32>
    %135 = vector.extract_strided_slice %119 {offsets = [1, 0], sizes = [1, 32], strides = [1, 1]} : vector<2x32xf32> to vector<1x32xf32>
    %136 = vector.broadcast %135 : vector<1x32xf32> to vector<8x32xf32>
    %137 = arith.mulf %134, %136 : vector<8x32xf32>
    %138 = arith.addf %133, %137 : vector<8x32xf32>
    %c0_47 = arith.constant 0 : index
    %c0_48 = arith.constant 0 : index
    %139 = vector.load %arg12[%c0_47, %c0_48] : memref<1x32xf32, #tpu.memory_space<vmem>>, vector<1x32xf32>
    %140 = vector.broadcast %139 : vector<1x32xf32> to vector<8x32xf32>
    %141 = arith.mulf %138, %140 : vector<8x32xf32>
    %c0_49 = arith.constant 0 : index
    %c0_50 = arith.constant 0 : index
    %142 = vector.load %arg3[%c0_49, %c0_50] : memref<8x128xf32, #tpu.memory_space<vmem>>, vector<8x128xf32>
    %143 = vector.extract_strided_slice %142 {offsets = [0, 0], sizes = [8, 32], strides = [1, 1]} : vector<8x128xf32> to vector<8x32xf32>
    %144 = arith.addf %116, %143 : vector<8x32xf32>
    %cst_51 = arith.constant 1.000000e+01 : f32
    %145 = vector.broadcast %cst_51 : f32 to vector<8x32xf32>
    %146 = arith.mulf %144, %145 : vector<8x32xf32>
    %cst_52 = arith.constant dense<0xFF800000> : vector<8xf32>
    %147 = vector.multi_reduction <maximumf>, %146, %cst_52 [1] : vector<8x32xf32> to vector<8xf32>
    %148 = vector.shape_cast %147 : vector<8xf32> to vector<8x1xf32>
    %149 = vector.broadcast %148 : vector<8x1xf32> to vector<8x32xf32>
    %150 = arith.subf %146, %149 : vector<8x32xf32>
    %151 = math.exp %150 : vector<8x32xf32>
    %cst_53 = arith.constant dense<0.000000e+00> : vector<8xf32>
    %152 = vector.multi_reduction <add>, %151, %cst_53 [1] : vector<8x32xf32> to vector<8xf32>
    %153 = vector.shape_cast %152 : vector<8xf32> to vector<8x1xf32>
    %154 = vector.broadcast %153 : vector<8x1xf32> to vector<8x32xf32>
    %155 = arith.divf %151, %154 : vector<8x32xf32>
    %156 = vector.extract_strided_slice %142 {offsets = [0, 32], sizes = [8, 32], strides = [1, 1]} : vector<8x128xf32> to vector<8x32xf32>
    %157 = arith.addf %141, %156 : vector<8x32xf32>
    %158 = vector.extract_strided_slice %142 {offsets = [0, 64], sizes = [8, 32], strides = [1, 1]} : vector<8x128xf32> to vector<8x32xf32>
    %159 = arith.addf %141, %158 : vector<8x32xf32>
    %160 = tpu.concatenate %157, %159 in 0 : vector<8x32xf32>, vector<8x32xf32> -> vector<16x32xf32>
    %cst_54 = arith.constant 1.000000e+01 : f32
    %161 = vector.broadcast %cst_54 : f32 to vector<16x32xf32>
    %162 = arith.mulf %160, %161 : vector<16x32xf32>
    %cst_55 = arith.constant dense<0xFF800000> : vector<16xf32>
    %163 = vector.multi_reduction <maximumf>, %162, %cst_55 [1] : vector<16x32xf32> to vector<16xf32>
    %164 = vector.shape_cast %163 : vector<16xf32> to vector<16x1xf32>
    %165 = vector.broadcast %164 : vector<16x1xf32> to vector<16x32xf32>
    %166 = arith.subf %162, %165 : vector<16x32xf32>
    %167 = math.exp %166 : vector<16x32xf32>
    %cst_56 = arith.constant dense<0.000000e+00> : vector<16xf32>
    %168 = vector.multi_reduction <add>, %167, %cst_56 [1] : vector<16x32xf32> to vector<16xf32>
    %169 = vector.shape_cast %168 : vector<16xf32> to vector<16x1xf32>
    %170 = vector.broadcast %169 : vector<16x1xf32> to vector<16x32xf32>
    %171 = arith.divf %167, %170 : vector<16x32xf32>
    %172 = vector.extract_strided_slice %171 {offsets = [0, 0], sizes = [8, 32], strides = [1, 1]} : vector<16x32xf32> to vector<8x32xf32>
    %173 = vector.extract_strided_slice %171 {offsets = [8, 0], sizes = [8, 32], strides = [1, 1]} : vector<16x32xf32> to vector<8x32xf32>
    %c0_57 = arith.constant 0 : index
    %c0_58 = arith.constant 0 : index
    %174 = vector.load %arg13[%c0_57, %c0_58] : memref<32x1xf32, #tpu.memory_space<vmem>>, vector<32x1xf32>
    %cst_59 = arith.constant dense<0.000000e+00> : vector<8x1xf32>
    %175 = tpu.matmul %173, %174, %cst_59 {dimension_numbers = #tpu.dot_dimension_numbers<[1], [0], [0], [1], [0, 0, 1, 1], [], []>} : vector<8x32xf32>, vector<32x1xf32>, vector<8x1xf32> -> vector<8x1xf32>
    %c0_60 = arith.constant 0 : index
    %c0_61 = arith.constant 0 : index
    %176 = vector.load %arg14[%c0_60, %c0_61] : memref<1x32xf32, #tpu.memory_space<vmem>>, vector<1x32xf32>
    %177 = vector.broadcast %175 : vector<8x1xf32> to vector<8x32xf32>
    %178 = vector.broadcast %176 : vector<1x32xf32> to vector<8x32xf32>
    %179 = arith.addf %177, %178 : vector<8x32xf32>
    %180 = arith.addf %179, %116 : vector<8x32xf32>
    %181 = vector.extract_strided_slice %142 {offsets = [0, 96], sizes = [8, 32], strides = [1, 1]} : vector<8x128xf32> to vector<8x32xf32>
    %182 = arith.addf %180, %181 : vector<8x32xf32>
    %cst_62 = arith.constant 1.000000e+01 : f32
    %183 = vector.broadcast %cst_62 : f32 to vector<8x32xf32>
    %184 = arith.mulf %182, %183 : vector<8x32xf32>
    %cst_63 = arith.constant dense<0xFF800000> : vector<8xf32>
    %185 = vector.multi_reduction <maximumf>, %184, %cst_63 [1] : vector<8x32xf32> to vector<8xf32>
    %186 = vector.shape_cast %185 : vector<8xf32> to vector<8x1xf32>
    %187 = vector.broadcast %186 : vector<8x1xf32> to vector<8x32xf32>
    %188 = arith.subf %184, %187 : vector<8x32xf32>
    %189 = math.exp %188 : vector<8x32xf32>
    %cst_64 = arith.constant dense<0.000000e+00> : vector<8xf32>
    %190 = vector.multi_reduction <add>, %189, %cst_64 [1] : vector<8x32xf32> to vector<8xf32>
    %191 = vector.shape_cast %190 : vector<8xf32> to vector<8x1xf32>
    %192 = vector.broadcast %191 : vector<8x1xf32> to vector<8x32xf32>
    %193 = arith.divf %189, %192 : vector<8x32xf32>
    %c0_65 = arith.constant 0 : index
    %c0_66 = arith.constant 0 : index
    %194 = vector.load %arg17[%c0_65, %c0_66] : memref<8x128xf32, #tpu.memory_space<vmem>>, vector<8x32xf32>
    tpu.vector_store %arg17[%c0_65, %c0_66], %173 {strides = array<i32>} : memref<8x128xf32, #tpu.memory_space<vmem>>, vector<8x32xf32>,
    %c0_67 = arith.constant 0 : index
    %c32 = arith.constant 32 : index
    %195 = vector.load %arg17[%c0_67, %c32] : memref<8x128xf32, #tpu.memory_space<vmem>>, vector<8x32xf32>
    tpu.vector_store %arg17[%c0_67, %c32], %193 {strides = array<i32>} : memref<8x128xf32, #tpu.memory_space<vmem>>, vector<8x32xf32>,
    %c0_68 = arith.constant 0 : index
    %c64 = arith.constant 64 : index
    %196 = vector.load %arg17[%c0_68, %c64] : memref<8x128xf32, #tpu.memory_space<vmem>>, vector<8x32xf32>
    tpu.vector_store %arg17[%c0_68, %c64], %141 {strides = array<i32>} : memref<8x128xf32, #tpu.memory_space<vmem>>, vector<8x32xf32>,
    %c0_69 = arith.constant 0 : index
    %c96 = arith.constant 96 : index
    %197 = vector.load %arg17[%c0_69, %c96] : memref<8x128xf32, #tpu.memory_space<vmem>>, vector<8x32xf32>
    tpu.vector_store %arg17[%c0_69, %c96], %180 {strides = array<i32>} : memref<8x128xf32, #tpu.memory_space<vmem>>, vector<8x32xf32>,
    %c0_70 = arith.constant 0 : index
    %c0_71 = arith.constant 0 : index
    %198 = vector.load %arg20[%c0_70, %c0_71] : memref<8x256xf32, #tpu.memory_space<vmem>>, vector<8x128xf32>
    tpu.vector_store %arg20[%c0_70, %c0_71], %40 {strides = array<i32>} : memref<8x256xf32, #tpu.memory_space<vmem>>, vector<8x128xf32>,
    %c0_72 = arith.constant 0 : index
    %c128_73 = arith.constant 128 : index
    %199 = vector.load %arg20[%c0_72, %c128_73] : memref<8x256xf32, #tpu.memory_space<vmem>>, vector<8x32xf32>
    tpu.vector_store %arg20[%c0_72, %c128_73], %155 {strides = array<i32>} : memref<8x256xf32, #tpu.memory_space<vmem>>, vector<8x32xf32>,
    %c0_74 = arith.constant 0 : index
    %c160 = arith.constant 160 : index
    %200 = vector.load %arg20[%c0_74, %c160] : memref<8x256xf32, #tpu.memory_space<vmem>>, vector<8x32xf32>
    tpu.vector_store %arg20[%c0_74, %c160], %172 {strides = array<i32>} : memref<8x256xf32, #tpu.memory_space<vmem>>, vector<8x32xf32>,
    %c0_75 = arith.constant 0 : index
    %c192 = arith.constant 192 : index
    %201 = vector.load %arg20[%c0_75, %c192] : memref<8x256xf32, #tpu.memory_space<vmem>>, vector<8x32xf32>
    tpu.vector_store %arg20[%c0_75, %c192], %193 {strides = array<i32>} : memref<8x256xf32, #tpu.memory_space<vmem>>, vector<8x32xf32>,
    %c0_76 = arith.constant 0 : index
    %c224 = arith.constant 224 : index
    %202 = vector.load %arg20[%c0_76, %c224] : memref<8x256xf32, #tpu.memory_space<vmem>>, vector<8x32xf32>
    tpu.vector_store %arg20[%c0_76, %c224], %173 {strides = array<i32>} : memref<8x256xf32, #tpu.memory_space<vmem>>, vector<8x32xf32>,
    %c0_77 = arith.constant 0 : index
    %c0_78 = arith.constant 0 : index
    %203 = vector.load %arg20[%c0_77, %c0_78] : memref<8x256xf32, #tpu.memory_space<vmem>>, vector<8x256xf32>
    %c0_79 = arith.constant 0 : index
    %c0_80 = arith.constant 0 : index
    %204 = vector.load %arg15[%c0_79, %c0_80] : memref<256x256xf32, #tpu.memory_space<vmem>>, vector<256x256xf32>
    %cst_81 = arith.constant dense<0.000000e+00> : vector<8x256xf32>
    %205 = tpu.matmul %203, %204, %cst_81 {dimension_numbers = #tpu.dot_dimension_numbers<[1], [0], [0], [1], [0, 0, 1, 1], [], []>} : vector<8x256xf32>, vector<256x256xf32>, vector<8x256xf32> -> vector<8x256xf32>
    %c0_82 = arith.constant 0 : index
    %c0_83 = arith.constant 0 : index
    %206 = vector.load %arg16[%c0_82, %c0_83] : memref<1x256xf32, #tpu.memory_space<vmem>>, vector<1x256xf32>
    %207 = vector.broadcast %206 : vector<1x256xf32> to vector<8x256xf32>
    %208 = arith.addf %205, %207 : vector<8x256xf32>
    %c0_84 = arith.constant 0 : index
    %c0_85 = arith.constant 0 : index
    %209 = vector.load %arg18[%c0_84, %c0_85] : memref<8x256xf32, #tpu.memory_space<vmem>>, vector<8x256xf32>
    tpu.vector_store %arg18[%c0_84, %c0_85], %208 {strides = array<i32>} : memref<8x256xf32, #tpu.memory_space<vmem>>, vector<8x256xf32>,
    return
  }
}

</mosaic_0001>

<bundles_post_ra>
// kernel: multi_mode_forward.1
= control target key start
LH: loop header
LB: loop body
LE: loop exit
PB: predicated region body
PF: predicated region fallthrough
CT: control target
= control target key end

     0   :  { %s2984_s0 = inlined_call_operand.vmem [shape: f32[8,224], index: 0, kind: input, shape index: {}]   ;;  %s2985_s1 = inlined_call_operand.vmem [shape: f32[8,384], index: 1, kind: input, shape index: {}]   ;;  %s2986_s2 = inlined_call_operand.vmem [shape: f32[8,2], index: 2, kind: input, shape index: {}]   ;;  %s2987_s3 = inlined_call_operand.vmem [shape: f32[8,128], index: 3, kind: input, shape index: {}]   ;;  %s2988_s4 = inlined_call_operand.hbm [shape: f32[224,1152], index: 4, kind: input, shape index: {}]   ;;  %s2989_s5 = inlined_call_operand.hbm [shape: f32[3,128,384], index: 5, kind: input, shape index: {}]   ;;  %s2990_s6 = inlined_call_operand.vmem [shape: f32[1,1152], index: 6, kind: input, shape index: {}]   ;;  %s2991_s7 = inlined_call_operand.vmem [shape: f32[1,384], index: 7, kind: input, shape index: {}]   ;;  %s2992_s8 = inlined_call_operand.vmem [shape: f32[128,32], index: 8, kind: input, shape index: {}]   ;;  %s2993_s9 = inlined_call_operand.vmem [shape: f32[1,32], index: 9, kind: input, shape index: {}]   ;;  %s2994_s10 = inlined_call_operand.vmem [shape: f32[2,32], index: 10, kind: input, shape index: {}]   ;;  %s2995_s11 = inlined_call_operand.vmem [shape: f32[2,32], index: 11, kind: input, shape index: {}]   ;;  %s2996_s12 = inlined_call_operand.vmem [shape: f32[1,32], index: 12, kind: input, shape index: {}]   ;;  %s2997_s13 = inlined_call_operand.vmem [shape: f32[32,1], index: 13, kind: input, shape index: {}]   ;;  %s2998_s14 = inlined_call_operand.vmem [shape: f32[1,32], index: 14, kind: input, shape index: {}]   ;;  %s2999_s15 = inlined_call_operand.vmem [shape: f32[256,256], index: 15, kind: input, shape index: {}]   ;;  %s3000_s16 = inlined_call_operand.vmem [shape: f32[1,256], index: 16, kind: input, shape index: {}]   ;;  %s3001_s17 = inlined_call_operand.vmem [shape: f32[8,128], index: 17, kind: output, shape index: {0}]   ;;  %s3002_s18 = inlined_call_operand.hbm [shape: f32[8,256], index: 18, kind: output, shape index: {1}]   ;;  %s3003_s19 = inlined_call_operand.vmem [shape: f32[8,384], index: 19, kind: output, shape index: {2}]  }
   0x1   :  { %3007 = sst [smem:[#allocation12_spill]] %s2984_s0 }
   0x2   :  { %3008 = sst [smem:[#allocation13_spill]] %s2985_s1 }
   0x3   :  { %3009 = sst [smem:[#allocation14_spill]] %s2986_s2 }
   0x4   :  { %3010 = sst [smem:[#allocation15_spill]] %s2987_s3 }
   0x5   :  { %25 = vsyncpa [#allocation4], 0 }
   0x6   :  { %26 = vsyncpa [#allocation7], 0 }
   0x7   :  { %27 = vsyncpa [#allocation5], 0  ;;  %s2285_s0 = smov [#allocation3]  }
   0x8   :  { %s41_s30 = sshll.u32 %s2285_s0, 4  ;;  %s42_s30 = int_to_ptr.vmem [resolvable:$true] %s41_s30 }
   0x9   :  { %s2227_s20 = scalar_lea.vmem %s42_s30, 32256  ;;  %p2232_p1 = scmp.lt.s32.totalorder %s42_s30, %s42_s30 }
   0xa   :  { %p2228_p0 = scmp.ne.s32.totalorder %s42_s30, %s2227_s20  ;;  %p2233_p2 = scmp.lt.s32.totalorder %s2227_s20, %s2227_s20 }
   0xc   :  { %p2234_p3 = por %p2233_p2, %p2232_p1 }
   0xe   :  { %p2235_p4 = pnand %p2234_p3, %p2228_p0 }
  0x10   :  { %2238 = shalt.err (!%p2235_p4)
}
  0x11   :  { %s2286_s21 = smov 1152   ;;  %s2287_s1 = smov 72  }
  0x12   :  { %47 = dma.hbm_to_vmem [thread:$0]  %s2988_s4, 32256, %s42_s30, [#allocation4], %s2286_s21, %s2286_s21, %s2287_s1  }
  0x13   :  { %s2288_s23 = smov [#allocation6]  }
  0x14   :  { %s53_s24 = sshll.u32 %s2288_s23, 4  ;;  %s54_s24 = int_to_ptr.vmem [resolvable:$true] %s53_s24 }
  0x15   :  { %s2247_s25 = scalar_lea.vmem %s54_s24, 18432  ;;  %p2252_p6 = scmp.lt.s32.totalorder %s54_s24, %s54_s24 }
  0x16   :  { %p2248_p5 = scmp.ne.s32.totalorder %s54_s24, %s2247_s25  ;;  %p2253_p7 = scmp.lt.s32.totalorder %s2247_s25, %s2247_s25 }
  0x18   :  { %p2254_p8 = por %p2253_p7, %p2252_p6 }
  0x1a   :  { %p2255_p9 = pnand %p2254_p8, %p2248_p5 }
  0x1c   :  { %2258 = shalt.err (!%p2255_p9)
}
  0x1d   :  { %s2289_s3 = smov 384   ;;  %s2290_s26 = smov 24  }
  0x1e   :  { %59 = dma.hbm_to_vmem [thread:$0]  %s2989_s5, 18432, %s54_s24, [#allocation7], %s2289_s3, %s2289_s3, %s2290_s26  }
  0x1f   :  { %2279 = dma.done.wait [#allocation4], 32256  }
  0x20   :  { %2280 = vsyncadd [#allocation4], 4294935040 }
  0x21   :  { %2281 = dma.done.wait [#allocation7], 18432  }
  0x22   :  { %2282 = vsyncadd [#allocation7], 4294948864  ;;  %v2291_v0 = vmov 0   ;;  %s3011_s0 = sld [smem:[#allocation14_spill]]  ;;  %v229_v2 = vld [vmem:[#allocation3 + $0x440] sm:$0xff]  ;;  %v228_v3 = vld [vmem:[#allocation3 + $0x438] sm:$0xff] }
  0x23   :  { %2168 = vset.pattern.permute.xlu0 %v2291_v0  ;;  %2170 = vset.pattern.permute.xlu1 %v2291_v0  ;;  %v220_v4 = vld [vmem:[#allocation3 + $0x3f8] sm:$0xff]  ;;  %v219_v5 = vld [vmem:[#allocation3 + $0x3f0] sm:$0xff]  ;;  %v210_v7 = vld [vmem:[#allocation3 + $0x3a8] sm:$0xff]  ;;  %v2292_v9 = vmov 1   ;;  %s3012_s20 = sld [smem:[#allocation15_spill]]  ;;  %s2293_s21 = smov 64  }
  0x24   :  { %398 = vmatprep.subr.mxu0 %v229_v2  ;;  %v211_v6 = vld [vmem:[#allocation3 + $0x3b0] sm:$0xff]  ;;  %v202_v8 = vld [vmem:[#allocation3 + $0x368] sm:$0xff]  ;;  %v201_v10 = vld [vmem:[#allocation3 + $0x360] sm:$0xff]  ;;  %vm394_vm0 = vcmask 785408   ;;  %s3013_s2 = sld [smem:[#allocation12_spill]]  ;;  %vm1550_vm1 = vcmask 261120  }
  0x25   :  { %399 = vmatpush1.msra.mxu0 %v228_v3  ;;  %v193_v11 = vld [vmem:[#allocation3 + $0x320] sm:$0xff]  ;;  %v192_v12 = vld [vmem:[#allocation3 + $0x318] sm:$0xff]  ;;  %v183_v15 = vld [vmem:[#allocation3 + $0x2d0] sm:$0xff]  ;;  %s3014_s4 = sld [smem:[#allocation13_spill]]  ;;  %vm2295_vm2 = vmmov 0   ;;  %s2296_s28 = smov 96  }
  0x26   :  { %400 = vmatprep.subr.mxu0 %v220_v4  ;;  %v184_v13 = vld [vmem:[#allocation3 + $0x2d8] sm:$0xff]  ;;  %v175_v16 = vld [vmem:[#allocation3 + $0x290] sm:$0xff]  ;;  %v174_v17 = vld [vmem:[#allocation3 + $0x288] sm:$0xff]  ;;  %vm1707_vm3 = vcmask 523520   ;;  %vm1713_vm4 = vcmask 785920   ;;  %vm1719_vm5 = vcmask 1048320  }
  0x27   :  { %401 = vmatpush1.msra.mxu0 %v219_v5  ;;  %v166_v18 = vld [vmem:[#allocation3 + $0x248] sm:$0xff]  ;;  %v165_v19 = vld [vmem:[#allocation3 + $0x240] sm:$0xff]  ;;  %v156_v21 = vld [vmem:[#allocation3 + $0x1f8] sm:$0xff]  ;;  %s2298_s29 = smov [#allocation8]  }
  0x28   :  { %v1504_v1 = vld [vmem:[%s3011_s0] sm:$0xff]  ;;  %402 = vmatprep.subr.mxu0 %v211_v6  ;;  %v157_v20 = vld [vmem:[#allocation3 + $0x200] sm:$0xff]  ;;  %v148_v22 = vld [vmem:[#allocation3 + $0x1b8] sm:$0xff]  ;;  %s1895_s0 = sshll.u32 %s2298_s29, 4  ;;  %s1896_s0 = int_to_ptr.vmem [resolvable:$true] %s1895_s0 }
  0x29   :  { %1509 = vperm.xlu0 %2168, %v1504_v1   ;;  %403 = vmatpush1.msra.mxu0 %v210_v7  ;;  %v1547_v14 = vld [vmem:[%s3012_s20] sm:$0xff]  ;;  %v138_v25 = vld [vmem:[#allocation3 + $0x168] sm:$0xff]  ;;  %v129_v28 = vld [vmem:[#allocation3 + $0x120] sm:$0xff]  ;;  %p2264_p11 = scmp.lt.s32.totalorder %s1896_s0, %s1896_s0 }
  0x2a   :  { %404 = vmatprep.subr.mxu0 %v202_v8  ;;  %1567 = vrot.lane.b32.xlu1 %v1547_v14, %s2293_s21  ;;  %v147_v23 = vld [vmem:[#allocation3 + $0x1b0] sm:$0xff]  ;;  %v2415_v26 = vld [vmem:[%s3013_s2 + $0x8] sm:$0xff]  ;;  %v130_v27 = vld [vmem:[#allocation3 + $0x128] sm:$0xff] }
  0x2b   :  { %405 = vmatpush1.msra.mxu0 %v201_v10  ;;  %v139_v24 = vld [vmem:[#allocation3 + $0x170] sm:$0xff]  ;;  %1912 = vmatprep.mubr.msk.f32.mxu0 %vm394_vm0, %v2415_v26  ;;  %v121_v29 = vld [vmem:[#allocation3 + $0xe0] sm:$0xff]  ;;  %v120_v30 = vld [vmem:[#allocation3 + $0xd8] sm:$0xff] }
  0x2c   :  { %406 = vmatprep.subr.mxu0 %v193_v11  ;;  %1913 = vmatprep.mubr.msk.f32.mxu1 %vm394_vm0, %v2415_v26  ;;  %v112_v31 = vld [vmem:[#allocation3 + $0x98] sm:$0xff]  ;;  %v111_v32 = vld [vmem:[#allocation3 + $0x90] sm:$0xff]  ;;  %v102_v34 = vld [vmem:[#allocation3 + $0x48] sm:$0xff] }
  0x2d   :  { %2169 = vset.pattern.permute.xlu0 %v2292_v9  ;;  %407 = vmatpush1.msra.mxu0 %v192_v12  ;;  %v103_v33 = vld [vmem:[#allocation3 + $0x50] sm:$0xff]  ;;  %v94_v35 = vld [vmem:[#allocation3 + $0x8] sm:$0xff]  ;;  %v93_v36 = vld [vmem:[#allocation3] sm:$0xff] }
  0x2e   :  { %1518 = vperm.xlu0 %2169, %v1504_v1   ;;  %408 = vmatprep.subr.mxu0 %v184_v13  ;;  %v337_v37 = vld [vmem:[#allocation3 + $0x7a0] sm:$0xff]  ;;  %v231_v38 = vld [vmem:[#allocation3 + $0x450] sm:$0xff]  ;;  %v336_v39 = vld [vmem:[#allocation3 + $0x798] sm:$0xff] }
  0x2f   :  { %409 = vmatpush1.msra.mxu0 %v183_v15  ;;  %469 = vmatprep.subr.mxu1 %v231_v38  ;;  %v230_v40 = vld [vmem:[#allocation3 + $0x448] sm:$0xff]  ;;  %v328_v41 = vld [vmem:[#allocation3 + $0x758] sm:$0xff]  ;;  %v221_v43 = vld [vmem:[#allocation3 + $0x400] sm:$0xff] }
  0x30   :  { %410 = vmatprep.subr.mxu0 %v175_v16  ;;  %470 = vmatpush1.msra.mxu1 %v230_v40  ;;  %v222_v42 = vld [vmem:[#allocation3 + $0x408] sm:$0xff]  ;;  %v327_v44 = vld [vmem:[#allocation3 + $0x750] sm:$0xff]  ;;  %v213_v45 = vld [vmem:[#allocation3 + $0x3c0] sm:$0xff] }
  0x31   :  { %411 = vmatpush1.msra.mxu0 %v174_v17  ;;  %471 = vmatprep.subr.mxu1 %v222_v42  ;;  %v319_v46 = vld [vmem:[#allocation3 + $0x710] sm:$0xff]  ;;  %v212_v47 = vld [vmem:[#allocation3 + $0x3b8] sm:$0xff]  ;;  %v318_v49 = vld [vmem:[#allocation3 + $0x708] sm:$0xff] }
  0x32   :  { %2171 = vset.pattern.permute.xlu0 %v2291_v0  ;;  %412 = vmatprep.subr.mxu0 %v166_v18  ;;  %v204_v48 = vld [vmem:[#allocation3 + $0x378] sm:$0xff]  ;;  %v203_v50 = vld [vmem:[#allocation3 + $0x370] sm:$0xff]  ;;  %v310_v51 = vld [vmem:[#allocation3 + $0x6c8] sm:$0xff] }
  0x33   :  { %413 = vmatpush1.msra.mxu0 %v165_v19  ;;  %472 = vmatpush1.msra.mxu1 %v221_v43  ;;  %v195_v52 = vld [vmem:[#allocation3 + $0x330] sm:$0xff]  ;;  %v309_v53 = vld [vmem:[#allocation3 + $0x6c0] sm:$0xff]  ;;  %v194_v54 = vld [vmem:[#allocation3 + $0x328] sm:$0xff] }
  0x34   :  { %414 = vmatprep.subr.mxu0 %v157_v20  ;;  %473 = vmatprep.subr.mxu1 %v213_v45  ;;  %v301_v55 = vld [vmem:[#allocation3 + $0x680] sm:$0xff]  ;;  %v186_v56 = vld [vmem:[#allocation3 + $0x2e8] sm:$0xff]  ;;  %v300_v57 = vld [vmem:[#allocation3 + $0x678] sm:$0xff] }
  0x35   :  { %415 = vmatpush1.msra.mxu0 %v156_v21  ;;  %474 = vmatpush1.msra.mxu1 %v212_v47  ;;  %v185_v58 = vld [vmem:[#allocation3 + $0x2e0] sm:$0xff]  ;;  %v292_v59 = vld [vmem:[#allocation3 + $0x638] sm:$0xff]  ;;  %v291_v61 = vld [vmem:[#allocation3 + $0x630] sm:$0xff] }
  0x36   :  { %416 = vmatprep.subr.mxu0 %v148_v22  ;;  %475 = vmatprep.subr.mxu1 %v204_v48  ;;  %v177_v60 = vld [vmem:[#allocation3 + $0x2a0] sm:$0xff]  ;;  %v176_v62 = vld [vmem:[#allocation3 + $0x298] sm:$0xff]  ;;  %v283_v63 = vld [vmem:[#allocation3 + $0x5f0] sm:$0xff] }
  0x37   :  { %417 = vmatpush1.msra.mxu0 %v147_v23  ;;  %476 = vmatpush1.msra.mxu1 %v203_v50  ;;  %v168_v0 = vld [vmem:[#allocation3 + $0x258] sm:$0xff]  ;;  %v282_v1 = vld [vmem:[#allocation3 + $0x5e8] sm:$0xff]  ;;  %v167_v2 = vld [vmem:[#allocation3 + $0x250] sm:$0xff] }
  0x38   :  { %418 = vmatprep.subr.mxu0 %v139_v24  ;;  %477 = vmatprep.subr.mxu1 %v195_v52  ;;  %v274_v3 = vld [vmem:[#allocation3 + $0x5a8] sm:$0xff]  ;;  %v159_v4 = vld [vmem:[#allocation3 + $0x210] sm:$0xff]  ;;  %v273_v5 = vld [vmem:[#allocation3 + $0x5a0] sm:$0xff] }
  0x39   :  { %419 = vmatpush1.msra.mxu0 %v138_v25  ;;  %478 = vmatpush1.msra.mxu1 %v194_v54  ;;  %v158_v6 = vld [vmem:[#allocation3 + $0x208] sm:$0xff]  ;;  %v265_v7 = vld [vmem:[#allocation3 + $0x560] sm:$0xff]  ;;  %v264_v9 = vld [vmem:[#allocation3 + $0x558] sm:$0xff] }
  0x3a   :  { %420 = vmatprep.subr.mxu0 %v130_v27  ;;  %479 = vmatprep.subr.mxu1 %v186_v56  ;;  %v150_v8 = vld [vmem:[#allocation3 + $0x1c8] sm:$0xff]  ;;  %v149_v10 = vld [vmem:[#allocation3 + $0x1c0] sm:$0xff]  ;;  %v256_v11 = vld [vmem:[#allocation3 + $0x518] sm:$0xff] }
  0x3b   :  { %421 = vmatpush1.msra.mxu0 %v129_v28  ;;  %480 = vmatpush1.msra.mxu1 %v185_v58  ;;  %v141_v12 = vld [vmem:[#allocation3 + $0x180] sm:$0xff]  ;;  %v255_v13 = vld [vmem:[#allocation3 + $0x510] sm:$0xff]  ;;  %v140_v14 = vld [vmem:[#allocation3 + $0x178] sm:$0xff] }
  0x3c   :  { %422 = vmatprep.subr.mxu0 %v121_v29  ;;  %481 = vmatprep.subr.mxu1 %v177_v60  ;;  %v247_v15 = vld [vmem:[#allocation3 + $0x4d0] sm:$0xff]  ;;  %v132_v16 = vld [vmem:[#allocation3 + $0x138] sm:$0xff]  ;;  %v246_v17 = vld [vmem:[#allocation3 + $0x4c8] sm:$0xff] }
  0x3d   :  { %423 = vmatpush1.msra.mxu0 %v120_v30  ;;  %482 = vmatpush1.msra.mxu1 %v176_v62  ;;  %v131_v18 = vld [vmem:[#allocation3 + $0x130] sm:$0xff]  ;;  %v238_v19 = vld [vmem:[#allocation3 + $0x488] sm:$0xff]  ;;  %v237_v21 = vld [vmem:[#allocation3 + $0x480] sm:$0xff] }
  0x3e   :  { %424 = vmatprep.subr.mxu0 %v112_v31  ;;  %483 = vmatprep.subr.mxu1 %v168_v0  ;;  %v123_v20 = vld [vmem:[#allocation3 + $0xf0] sm:$0xff]  ;;  %v122_v22 = vld [vmem:[#allocation3 + $0xe8] sm:$0xff]  ;;  %v233_v23 = vld [vmem:[#allocation3 + $0x460] sm:$0xff] }
  0x3f   :  { %425 = vmatpush1.msra.mxu0 %v111_v32  ;;  %484 = vmatpush1.msra.mxu1 %v167_v2  ;;  %v2424_v24 = vld [vmem:[%s3013_s2] sm:$0xff]  ;;  %v232_v25 = vld [vmem:[#allocation3 + $0x458] sm:$0xff]  ;;  %v114_v28 = vld [vmem:[#allocation3 + $0xa8] sm:$0xff] }
  0x40   :  { %426 = vmatprep.subr.mxu0 %v103_v33  ;;  %485 = vmatprep.subr.mxu1 %v159_v4  ;;  %v224_v27 = vld [vmem:[#allocation3 + $0x418] sm:$0xff]  ;;  %v223_v29 = vld [vmem:[#allocation3 + $0x410] sm:$0xff]  ;;  %v113_v30 = vld [vmem:[#allocation3 + $0xa0] sm:$0xff] }
  0x41   :  { %427 = vmatpush1.msra.mxu0 %v102_v34  ;;  %486 = vmatpush1.msra.mxu1 %v158_v6  ;;  %v215_v31 = vld [vmem:[#allocation3 + $0x3d0] sm:$0xff]  ;;  %v105_v32 = vld [vmem:[#allocation3 + $0x60] sm:$0xff]  ;;  %v214_v33 = vld [vmem:[#allocation3 + $0x3c8] sm:$0xff] }
  0x42   :  { %428 = vmatprep.subr.mxu0 %v94_v35  ;;  %487 = vmatprep.subr.mxu1 %v150_v8  ;;  %v104_v34 = vld [vmem:[#allocation3 + $0x58] sm:$0xff]  ;;  %v206_v35 = vld [vmem:[#allocation3 + $0x388] sm:$0xff]  ;;  %v95_v38 = vld [vmem:[#allocation3 + $0x10] sm:$0xff] }
  0x43   :  { %429 = vmatpush1.msra.mxu0 %v93_v36  ;;  %488 = vmatpush1.msra.mxu1 %v149_v10  ;;  %v96_v36 = vld [vmem:[#allocation3 + $0x18] sm:$0xff]  ;;  %v339_v40 = vld [vmem:[#allocation3 + $0x7b0] sm:$0xff]  ;;  %v338_v42 = vld [vmem:[#allocation3 + $0x7a8] sm:$0xff] }
  0x44   :  { %438 = vmatprep.subr.mxu0 %v337_v37  ;;  %489 = vmatprep.subr.mxu1 %v141_v12  ;;  %v205_v37 = vld [vmem:[#allocation3 + $0x380] sm:$0xff]  ;;  %v188_v43 = vld [vmem:[#allocation3 + $0x2f8] sm:$0xff]  ;;  %v187_v45 = vld [vmem:[#allocation3 + $0x2f0] sm:$0xff] }
  0x45   :  { %439 = vmatpush2.msra.mxu0 %v336_v39  ;;  %490 = vmatpush1.msra.mxu1 %v140_v14  ;;  %v197_v39 = vld [vmem:[#allocation3 + $0x340] sm:$0xff]  ;;  %v179_v47 = vld [vmem:[#allocation3 + $0x2b0] sm:$0xff]  ;;  %v320_v50 = vld [vmem:[#allocation3 + $0x718] sm:$0xff] }
  0x46   :  { %440 = vmatprep.subr.mxu0 %v328_v41  ;;  %491 = vmatprep.subr.mxu1 %v132_v16  ;;  %v196_v41 = vld [vmem:[#allocation3 + $0x338] sm:$0xff]  ;;  %v321_v48 = vld [vmem:[#allocation3 + $0x720] sm:$0xff]  ;;  %v311_v54 = vld [vmem:[#allocation3 + $0x6d0] sm:$0xff] }
  0x47   :  { %441 = vmatpush2.msra.mxu0 %v327_v44  ;;  %492 = vmatpush1.msra.mxu1 %v131_v18  ;;  %v330_v44 = vld [vmem:[#allocation3 + $0x768] sm:$0xff]  ;;  %v312_v52 = vld [vmem:[#allocation3 + $0x6d8] sm:$0xff]  ;;  %v303_v56 = vld [vmem:[#allocation3 + $0x690] sm:$0xff] }
  0x48   :  { %442 = vmatprep.subr.mxu0 %v319_v46  ;;  %493 = vmatprep.subr.mxu1 %v123_v20  ;;  %v329_v46 = vld [vmem:[#allocation3 + $0x760] sm:$0xff]  ;;  %v302_v58 = vld [vmem:[#allocation3 + $0x688] sm:$0xff]  ;;  %v284_v2 = vld [vmem:[#allocation3 + $0x5f8] sm:$0xff] }
  0x49   :  { %443 = vmatpush2.msra.mxu0 %v318_v49  ;;  %494 = vmatpush1.msra.mxu1 %v122_v22  ;;  %v178_v49 = vld [vmem:[#allocation3 + $0x2a8] sm:$0xff]  ;;  %v293_v62 = vld [vmem:[#allocation3 + $0x640] sm:$0xff]  ;;  %v276_v4 = vld [vmem:[#allocation3 + $0x5b8] sm:$0xff] }
  0x4a   :  { %444 = vmatprep.subr.mxu0 %v310_v51  ;;  %495 = vmatprep.subr.mxu1 %v114_v28  ;;  %v170_v51 = vld [vmem:[#allocation3 + $0x268] sm:$0xff]  ;;  %v285_v0 = vld [vmem:[#allocation3 + $0x600] sm:$0xff]  ;;  %v275_v6 = vld [vmem:[#allocation3 + $0x5b0] sm:$0xff] }
  0x4b   :  { %445 = vmatpush2.msra.mxu0 %v309_v53  ;;  %496 = vmatpush1.msra.mxu1 %v113_v30  ;;  %v169_v53 = vld [vmem:[#allocation3 + $0x260] sm:$0xff]  ;;  %v294_v60 = vld [vmem:[#allocation3 + $0x648] sm:$0xff]  ;;  %v267_v8 = vld [vmem:[#allocation3 + $0x570] sm:$0xff] }
  0x4c   :  { %446 = vmatprep.subr.mxu0 %v301_v55  ;;  %497 = vmatprep.subr.mxu1 %v105_v32  ;;  %v161_v55 = vld [vmem:[#allocation3 + $0x220] sm:$0xff]  ;;  %v266_v10 = vld [vmem:[#allocation3 + $0x568] sm:$0xff]  ;;  %v248_v18 = vld [vmem:[#allocation3 + $0x4d8] sm:$0xff] }
  0x4d   :  { %447 = vmatpush2.msra.mxu0 %v300_v57  ;;  %498 = vmatpush1.msra.mxu1 %v104_v34  ;;  %v160_v57 = vld [vmem:[#allocation3 + $0x218] sm:$0xff]  ;;  %v258_v12 = vld [vmem:[#allocation3 + $0x528] sm:$0xff]  ;;  %v257_v14 = vld [vmem:[#allocation3 + $0x520] sm:$0xff] }
  0x4e   :  { %448 = vmatprep.subr.mxu0 %v292_v59  ;;  %499 = vmatprep.subr.mxu1 %v96_v36  ;;  %v152_v59 = vld [vmem:[#allocation3 + $0x1d8] sm:$0xff]  ;;  %v249_v16 = vld [vmem:[#allocation3 + $0x4e0] sm:$0xff]  ;;  %v239_v22 = vld [vmem:[#allocation3 + $0x490] sm:$0xff] }
  0x4f   :  { %449 = vmatpush2.msra.mxu0 %v291_v61  ;;  %500 = vmatpush1.msra.mxu1 %v95_v38  ;;  %v151_v61 = vld [vmem:[#allocation3 + $0x1d0] sm:$0xff]  ;;  %v240_v20 = vld [vmem:[#allocation3 + $0x498] sm:$0xff]  ;;  %v322_v34 = vld [vmem:[#allocation3 + $0x728] sm:$0xff] }
  0x50   :  { %450 = vmatprep.subr.mxu0 %v283_v63  ;;  %509 = vmatprep.subr.mxu1 %v339_v40  ;;  %v143_v63 = vld [vmem:[#allocation3 + $0x190] sm:$0xff]  ;;  %v332_v28 = vld [vmem:[#allocation3 + $0x778] sm:$0xff]  ;;  %v314_v36 = vld [vmem:[#allocation3 + $0x6e8] sm:$0xff] }
  0x51   :  { %451 = vmatpush2.msra.mxu0 %v282_v1  ;;  %510 = vmatpush2.msra.mxu1 %v338_v42  ;;  %v142_v1 = vld [vmem:[#allocation3 + $0x188] sm:$0xff]  ;;  %v331_v30 = vld [vmem:[#allocation3 + $0x770] sm:$0xff]  ;;  %v313_v38 = vld [vmem:[#allocation3 + $0x6e0] sm:$0xff] }
  0x52   :  { %452 = vmatprep.subr.mxu0 %v274_v3  ;;  %511 = vmatprep.subr.mxu1 %v330_v44  ;;  %v134_v3 = vld [vmem:[#allocation3 + $0x148] sm:$0xff]  ;;  %v323_v32 = vld [vmem:[#allocation3 + $0x730] sm:$0xff]  ;;  %v305_v40 = vld [vmem:[#allocation3 + $0x6a0] sm:$0xff] }
  0x53   :  { %453 = vmatpush2.msra.mxu0 %v273_v5  ;;  %512 = vmatpush2.msra.mxu1 %v329_v46  ;;  %v133_v5 = vld [vmem:[#allocation3 + $0x140] sm:$0xff]  ;;  %v304_v42 = vld [vmem:[#allocation3 + $0x698] sm:$0xff]  ;;  %v295_v46 = vld [vmem:[#allocation3 + $0x650] sm:$0xff] }
  0x54   :  { %454 = vmatprep.subr.mxu0 %v265_v7  ;;  %513 = vmatprep.subr.mxu1 %v321_v48  ;;  %v125_v7 = vld [vmem:[#allocation3 + $0x100] sm:$0xff]  ;;  %v296_v44 = vld [vmem:[#allocation3 + $0x658] sm:$0xff]  ;;  %v287_v48 = vld [vmem:[#allocation3 + $0x610] sm:$0xff] }
  0x55   :  { %455 = vmatpush2.msra.mxu0 %v264_v9  ;;  %514 = vmatpush2.msra.mxu1 %v320_v50  ;;  %v124_v9 = vld [vmem:[#allocation3 + $0xf8] sm:$0xff]  ;;  %v286_v50 = vld [vmem:[#allocation3 + $0x608] sm:$0xff] }
  0x56   :  { %456 = vmatprep.subr.mxu0 %v256_v11  ;;  %515 = vmatprep.subr.mxu1 %v312_v52  ;;  %v116_v11 = vld [vmem:[#allocation3 + $0xb8] sm:$0xff]  ;;  %v278_v52 = vld [vmem:[#allocation3 + $0x5c8] sm:$0xff] }
  0x57   :  { %457 = vmatpush2.msra.mxu0 %v255_v13  ;;  %516 = vmatpush2.msra.mxu1 %v311_v54  ;;  %v115_v13 = vld [vmem:[#allocation3 + $0xb0] sm:$0xff]  ;;  %v277_v54 = vld [vmem:[#allocation3 + $0x5c0] sm:$0xff] }
  0x58   :  { %458 = vmatprep.subr.mxu0 %v247_v15  ;;  %517 = vmatprep.subr.mxu1 %v303_v56  ;;  %v107_v15 = vld [vmem:[#allocation3 + $0x70] sm:$0xff]  ;;  %v269_v56 = vld [vmem:[#allocation3 + $0x580] sm:$0xff] }
  0x59   :  { %459 = vmatpush2.msra.mxu0 %v246_v17  ;;  %518 = vmatpush2.msra.mxu1 %v302_v58  ;;  %v106_v17 = vld [vmem:[#allocation3 + $0x68] sm:$0xff]  ;;  %v268_v58 = vld [vmem:[#allocation3 + $0x578] sm:$0xff] }
  0x5a   :  { %460 = vmatprep.subr.mxu0 %v238_v19  ;;  %519 = vmatprep.subr.mxu1 %v294_v60  ;;  %v98_v19 = vld [vmem:[#allocation3 + $0x28] sm:$0xff]  ;;  %v260_v60 = vld [vmem:[#allocation3 + $0x538] sm:$0xff] }
  0x5b   :  { %461 = vmatpush2.msra.mxu0 %v237_v21  ;;  %520 = vmatpush2.msra.mxu1 %v293_v62  ;;  %v97_v21 = vld [vmem:[#allocation3 + $0x20] sm:$0xff]  ;;  %v259_v62 = vld [vmem:[#allocation3 + $0x530] sm:$0xff] }
  0x5c   :  { %540 = vmatprep.subr.mxu0 %v233_v23  ;;  %463 = vmatmul.mubr.f32.vlgmr.msra.gmra.mxu0 %v2424_v24  ;;  %v341_v23 = vld [vmem:[#allocation3 + $0x7c0] sm:$0xff] }
  0x5d   :  { %541 = vmatpush1.msra.mxu0 %v232_v25  ;;  %1914 = vmatprep.mubr.msk.f32.mxu0 %vm394_vm0, %v2415_v26  ;;  %v235_v25 = vld [vmem:[#allocation3 + $0x470] sm:$0xff] }
  0x5e   :  { %542 = vmatprep.subr.mxu0 %v224_v27  ;;  %521 = vmatprep.subr.mxu1 %v285_v0  ;;  %v340_v27 = vld [vmem:[#allocation3 + $0x7b8] sm:$0xff]  ;;  %v251_v0 = vld [vmem:[#allocation3 + $0x4f0] sm:$0xff] }
  0x5f   :  { %543 = vmatpush1.msra.mxu0 %v223_v29  ;;  %522 = vmatpush2.msra.mxu1 %v284_v2  ;;  %v234_v29 = vld [vmem:[#allocation3 + $0x468] sm:$0xff] }
  0x60   :  { %544 = vmatprep.subr.mxu0 %v215_v31  ;;  %523 = vmatprep.subr.mxu1 %v276_v4  ;;  %v226_v31 = vld [vmem:[#allocation3 + $0x428] sm:$0xff] }
  0x61   :  { %545 = vmatpush1.msra.mxu0 %v214_v33  ;;  %524 = vmatpush2.msra.mxu1 %v275_v6  ;;  %v225_v33 = vld [vmem:[#allocation3 + $0x420] sm:$0xff]  ;;  %v250_v2 = vld [vmem:[#allocation3 + $0x4e8] sm:$0xff] }
  0x62   :  { %546 = vmatprep.subr.mxu0 %v206_v35  ;;  %525 = vmatprep.subr.mxu1 %v267_v8  ;;  %v217_v35 = vld [vmem:[#allocation3 + $0x3e0] sm:$0xff]  ;;  %v242_v4 = vld [vmem:[#allocation3 + $0x4a8] sm:$0xff]  ;;  %v349_v8 = vlaneseq }
  0x63   :  { %547 = vmatpush1.msra.mxu0 %v205_v37  ;;  %526 = vmatpush2.msra.mxu1 %v266_v10  ;;  %v216_v37 = vld [vmem:[#allocation3 + $0x3d8] sm:$0xff]  ;;  %v241_v6 = vld [vmem:[#allocation3 + $0x4a0] sm:$0xff]  ;;  %v135_v10 = vld [vmem:[#allocation3 + $0x150] sm:$0xff] }
  0x64   :  { %548 = vmatprep.subr.mxu0 %v197_v39  ;;  %527 = vmatprep.subr.mxu1 %v258_v12  ;;  %v208_v39 = vld [vmem:[#allocation3 + $0x398] sm:$0xff]  ;;  %v2294_v12 = vmov 0.0  }
  0x65   :  { %549 = vmatpush1.msra.mxu0 %v196_v41  ;;  %528 = vmatpush2.msra.mxu1 %v257_v14  ;;  %v207_v41 = vld [vmem:[#allocation3 + $0x390] sm:$0xff]  ;;  %v2432_v14 = vshrl.u32 %v349_v8, 7 }
  0x66   :  { %550 = vmatprep.subr.mxu0 %v188_v43  ;;  %529 = vmatprep.subr.mxu1 %v249_v16  ;;  %v199_v43 = vld [vmem:[#allocation3 + $0x350] sm:$0xff]  ;;  %v218_v16 = vld [vmem:[#allocation3 + $0x3e8] sm:$0xff] }
  0x67   :  { %551 = vmatpush1.msra.mxu0 %v187_v45  ;;  %530 = vmatpush2.msra.mxu1 %v248_v18  ;;  %v198_v45 = vld [vmem:[#allocation3 + $0x348] sm:$0xff]  ;;  %v117_v18 = vld [vmem:[#allocation3 + $0xc0] sm:$0xff] }
  0x68   :  { %552 = vmatprep.subr.mxu0 %v179_v47  ;;  %531 = vmatprep.subr.mxu1 %v240_v20  ;;  %v190_v47 = vld [vmem:[#allocation3 + $0x308] sm:$0xff]  ;;  %v109_v20 = vld [vmem:[#allocation3 + $0x80] sm:$0xff] }
  0x69   :  { %553 = vmatpush1.msra.mxu0 %v178_v49  ;;  %532 = vmatpush2.msra.mxu1 %v239_v22  ;;  %v189_v49 = vld [vmem:[#allocation3 + $0x300] sm:$0xff]  ;;  %v108_v22 = vld [vmem:[#allocation3 + $0x78] sm:$0xff] }
  0x6a   :  { %554 = vmatprep.subr.mxu0 %v170_v51  ;;  %611 = vmatprep.subr.mxu1 %v235_v25  ;;  %v181_v51 = vld [vmem:[#allocation3 + $0x2c0] sm:$0xff]  ;;  %v1505_v25 = vld [vmem:[%s2994_s10] sm:$0x3] }
  0x6b   :  { %555 = vmatpush1.msra.mxu0 %v169_v53  ;;  %534 = vmatmul.mubr.f32.vlgmr.msra.gmra.mxu1 %v2424_v24  ;;  %v180_v53 = vld [vmem:[#allocation3 + $0x2b8] sm:$0xff] }
  0x6c   :  { %556 = vmatprep.subr.mxu0 %v161_v55  ;;  %612 = vmatpush1.msra.mxu1 %v234_v29  ;;  %v172_v55 = vld [vmem:[#allocation3 + $0x278] sm:$0xff]  ;;  %v191_v29 = vld [vmem:[#allocation3 + $0x310] sm:$0xff] }
  0x6d   :  { %557 = vmatpush1.msra.mxu0 %v160_v57  ;;  %613 = vmatprep.subr.mxu1 %v226_v31  ;;  %v171_v57 = vld [vmem:[#allocation3 + $0x270] sm:$0xff] }
  0x6e   :  { %558 = vmatprep.subr.mxu0 %v152_v59  ;;  %614 = vmatpush1.msra.mxu1 %v225_v33  ;;  %v163_v59 = vld [vmem:[#allocation3 + $0x230] sm:$0xff]  ;;  %v342_v33 = vld [vmem:[#allocation3 + $0x7c8] sm:$0xff] }
  0x6f   :  { %559 = vmatpush1.msra.mxu0 %v151_v61  ;;  %615 = vmatprep.subr.mxu1 %v217_v35  ;;  %v162_v61 = vld [vmem:[#allocation3 + $0x228] sm:$0xff] }
  0x70   :  { %560 = vmatprep.subr.mxu0 %v143_v63  ;;  %616 = vmatpush1.msra.mxu1 %v216_v37  ;;  %v154_v63 = vld [vmem:[#allocation3 + $0x1e8] sm:$0xff]  ;;  %v333_v37 = vld [vmem:[#allocation3 + $0x780] sm:$0xff] }
  0x71   :  { %561 = vmatpush1.msra.mxu0 %v142_v1  ;;  %617 = vmatprep.subr.mxu1 %v208_v39  ;;  %v153_v1 = vld [vmem:[#allocation3 + $0x1e0] sm:$0xff]  ;;  %v334_v35 = vld [vmem:[#allocation3 + $0x788] sm:$0xff] }
  0x72   :  { %562 = vmatprep.subr.mxu0 %v134_v3  ;;  %618 = vmatpush1.msra.mxu1 %v207_v41  ;;  %v145_v3 = vld [vmem:[#allocation3 + $0x1a0] sm:$0xff] }
  0x73   :  { %563 = vmatpush1.msra.mxu0 %v133_v5  ;;  %619 = vmatprep.subr.mxu1 %v199_v43  ;;  %v144_v5 = vld [vmem:[#allocation3 + $0x198] sm:$0xff]  ;;  %v325_v39 = vld [vmem:[#allocation3 + $0x740] sm:$0xff] }
  0x74   :  { %564 = vmatprep.subr.mxu0 %v125_v7  ;;  %620 = vmatpush1.msra.mxu1 %v198_v45  ;;  %v136_v7 = vld [vmem:[#allocation3 + $0x158] sm:$0xff] }
  0x75   :  { %565 = vmatpush1.msra.mxu0 %v124_v9  ;;  %621 = vmatprep.subr.mxu1 %v190_v47  ;;  %v236_v9 = vld [vmem:[#allocation3 + $0x478] sm:$0xff] }
  0x76   :  { %566 = vmatprep.subr.mxu0 %v116_v11  ;;  %622 = vmatpush1.msra.mxu1 %v189_v49  ;;  %v127_v11 = vld [vmem:[#allocation3 + $0x110] sm:$0xff]  ;;  %v324_v43 = vld [vmem:[#allocation3 + $0x738] sm:$0xff] }
  0x77   :  { %567 = vmatpush1.msra.mxu0 %v115_v13  ;;  %623 = vmatprep.subr.mxu1 %v181_v51  ;;  %v227_v13 = vld [vmem:[#allocation3 + $0x430] sm:$0xff]  ;;  %v316_v45 = vld [vmem:[#allocation3 + $0x6f8] sm:$0xff] }
  0x78   :  { %568 = vmatprep.subr.mxu0 %v107_v15  ;;  %624 = vmatpush1.msra.mxu1 %v180_v53  ;;  %v126_v15 = vld [vmem:[#allocation3 + $0x108] sm:$0xff]  ;;  %v155_v49 = vld [vmem:[#allocation3 + $0x1f0] sm:$0xff] }
  0x79   :  { %569 = vmatpush1.msra.mxu0 %v106_v17  ;;  %625 = vmatprep.subr.mxu1 %v172_v55  ;;  %v118_v17 = vld [vmem:[#allocation3 + $0xc8] sm:$0xff] }
  0x7a   :  { %570 = vmatprep.subr.mxu0 %v98_v19  ;;  %626 = vmatpush1.msra.mxu1 %v171_v57  ;;  %v209_v19 = vld [vmem:[#allocation3 + $0x3a0] sm:$0xff]  ;;  %v146_v55 = vld [vmem:[#allocation3 + $0x1a8] sm:$0xff] }
  0x7b   :  { %571 = vmatpush1.msra.mxu0 %v97_v21  ;;  %627 = vmatprep.subr.mxu1 %v163_v59  ;;  %v2439_v21 = vsub.s32 0, %v2432_v14  ;;  %v137_v59 = vld [vmem:[#allocation3 + $0x160] sm:$0xff] }
  0x7c   :  { %580 = vmatprep.subr.mxu0 %v341_v23  ;;  %628 = vmatpush1.msra.mxu1 %v162_v61  ;;  %v200_v23 = vld [vmem:[#allocation3 + $0x358] sm:$0xff] }
  0x7d   :  { %581 = vmatpush2.msra.mxu0 %v340_v27  ;;  %629 = vmatprep.subr.mxu1 %v154_v63  ;;  %v100_v27 = vld [vmem:[#allocation3 + $0x38] sm:$0xff]  ;;  %v1515_v31 = vrot.slane %v1505_v25, %v2439_v21 }
  0x7e   :  { %582 = vmatprep.subr.mxu0 %v332_v28  ;;  %630 = vmatpush1.msra.mxu1 %v153_v1  ;;  %v99_v28 = vld [vmem:[#allocation3 + $0x30] sm:$0xff]  ;;  %v288_v63 = vld [vmem:[#allocation3 + $0x618] sm:$0xff] }
  0x7f   :  { %583 = vmatpush2.msra.mxu0 %v331_v30  ;;  %631 = vmatprep.subr.mxu1 %v145_v3  ;;  %v343_v30 = vld [vmem:[#allocation3 + $0x7d0] sm:$0xff] }
  0x80   :  { %584 = vmatprep.subr.mxu0 %v323_v32  ;;  %632 = vmatpush1.msra.mxu1 %v144_v5  ;;  %v2448_v32 = vsub.s32 1, %v2432_v14  ;;  %v1927_v1 = vld [vmem:[%s2996_s12] ss:$0 sm:$0xff] }
  0x81   :  { %585 = vmatpush2.msra.mxu0 %v322_v34  ;;  %633 = vmatprep.subr.mxu1 %v136_v7  ;;  %v182_v34 = vld [vmem:[#allocation3 + $0x2c8] sm:$0xff]  ;;  %v271_v7 = vld [vmem:[#allocation3 + $0x590] sm:$0xff] }
  0x82   :  { %586 = vmatprep.subr.mxu0 %v314_v36  ;;  %634 = vmatpush1.msra.mxu1 %v135_v10  ;;  %v110_v10 = vld [vmem:[#allocation3 + $0x88] sm:$0xff] }
  0x83   :  { %587 = vmatpush2.msra.mxu0 %v313_v38  ;;  %635 = vmatprep.subr.mxu1 %v127_v11  ;;  %v173_v38 = vld [vmem:[#allocation3 + $0x280] sm:$0xff]  ;;  %v262_v11 = vld [vmem:[#allocation3 + $0x548] sm:$0xff] }
  0x84   :  { %588 = vmatprep.subr.mxu0 %v305_v40  ;;  %636 = vmatpush1.msra.mxu1 %v126_v15  ;;  %v1506_v40 = vld [vmem:[%s2995_s11] sm:$0x3]  ;;  %v261_v15 = vld [vmem:[#allocation3 + $0x540] sm:$0xff] }
  0x85   :  { %589 = vmatpush2.msra.mxu0 %v304_v42  ;;  %637 = vmatprep.subr.mxu1 %v118_v17  ;;  %v1524_v42 = vrot.slane %v1505_v25, %v2448_v32  ;;  %v1530_v47 = vrot.slane %v1506_v40, %v2439_v21  ;;  %v253_v17 = vld [vmem:[#allocation3 + $0x500] sm:$0xff]  ;;  %v335_v25 = vld [vmem:[#allocation3 + $0x790] sm:$0xff] }
  0x86   :  { %590 = vmatprep.subr.mxu0 %v296_v44  ;;  %638 = vmatpush1.msra.mxu1 %v117_v18  ;;  %v164_v44 = vld [vmem:[#allocation3 + $0x238] sm:$0xff] }
  0x87   :  { %591 = vmatpush2.msra.mxu0 %v295_v46  ;;  %639 = vmatprep.subr.mxu1 %v109_v20  ;;  %v315_v46 = vld [vmem:[#allocation3 + $0x6f0] sm:$0xff]  ;;  %v252_v20 = vld [vmem:[#allocation3 + $0x4f8] sm:$0xff] }
  0x88   :  { %592 = vmatprep.subr.mxu0 %v287_v48  ;;  %640 = vmatpush1.msra.mxu1 %v108_v22 }
  0x89   :  { %593 = vmatpush2.msra.mxu0 %v286_v50  ;;  %641 = vmatprep.subr.mxu1 %v100_v27  ;;  %v307_v50 = vld [vmem:[#allocation3 + $0x6b0] sm:$0xff] }
  0x8a   :  { %594 = vmatprep.subr.mxu0 %v278_v52  ;;  %642 = vmatpush1.msra.mxu1 %v99_v28  ;;  %v1536_v52 = vrot.slane %v1506_v40, %v2448_v32  ;;  %v243_v27 = vld [vmem:[#allocation3 + $0x4b0] sm:$0xff]  ;;  %v326_v28 = vld [vmem:[#allocation3 + $0x748] sm:$0xff]  ;;  %v784_v40 = vld [vmem:[#allocation6 + $0x100] sm:$0xff] }
  0x8b   :  { %595 = vmatpush2.msra.mxu0 %v277_v54  ;;  %651 = vmatprep.subr.mxu1 %v343_v30  ;;  %v306_v54 = vld [vmem:[#allocation3 + $0x6a8] sm:$0xff]  ;;  %v799_v30 = vld [vmem:[#allocation6 + $0x178] sm:$0xff] }
  0x8c   :  { %596 = vmatprep.subr.mxu0 %v269_v56  ;;  %652 = vmatpush2.msra.mxu1 %v342_v33  ;;  %v298_v56 = vld [vmem:[#allocation3 + $0x668] sm:$0xff]  ;;  %v796_v33 = vld [vmem:[#allocation6 + $0x160] sm:$0xff] }
  0x8d   :  { %597 = vmatpush2.msra.mxu0 %v268_v58  ;;  %653 = vmatprep.subr.mxu1 %v334_v35  ;;  %v297_v58 = vld [vmem:[#allocation3 + $0x660] sm:$0xff]  ;;  %v793_v35 = vld [vmem:[#allocation6 + $0x148] sm:$0xff] }
  0x8e   :  { %598 = vmatprep.subr.mxu0 %v260_v60  ;;  %654 = vmatpush2.msra.mxu1 %v333_v37  ;;  %v289_v60 = vld [vmem:[#allocation3 + $0x620] sm:$0xff] }
  0x8f   :  { %599 = vmatpush2.msra.mxu0 %v259_v62  ;;  %655 = vmatprep.subr.mxu1 %v325_v39  ;;  %v281_v37 = vld [vmem:[#allocation3 + $0x5e0] sm:$0xff]  ;;  %v272_v39 = vld [vmem:[#allocation3 + $0x598] sm:$0xff] }
  0x90   :  { %600 = vmatprep.subr.mxu0 %v251_v0  ;;  %656 = vmatpush2.msra.mxu1 %v324_v43  ;;  %v128_v0 = vld [vmem:[#allocation3 + $0x118] sm:$0xff]  ;;  %v254_v43 = vld [vmem:[#allocation3 + $0x508] sm:$0xff] }
  0x91   :  { %601 = vmatpush2.msra.mxu0 %v250_v2  ;;  %657 = vmatprep.subr.mxu1 %v316_v45  ;;  %v280_v2 = vld [vmem:[#allocation3 + $0x5d8] sm:$0xff]  ;;  %v245_v45 = vld [vmem:[#allocation3 + $0x4c0] sm:$0xff] }
  0x92   :  { %602 = vmatprep.subr.mxu0 %v242_v4  ;;  %658 = vmatpush2.msra.mxu1 %v315_v46  ;;  %v279_v4 = vld [vmem:[#allocation3 + $0x5d0] sm:$0xff]  ;;  %v775_v46 = vld [vmem:[#allocation6 + $0xb8] sm:$0xff] }
  0x93   :  { %603 = vmatpush2.msra.mxu0 %v241_v6  ;;  %659 = vmatprep.subr.mxu1 %v307_v50  ;;  %v119_v6 = vld [vmem:[#allocation3 + $0xd0] sm:$0xff] }
  0x94   :  { %682 = vmatprep.subr.mxu0 %v2294_v12  ;;  %605 = vmatmul.mubr.f32.vlgmr.msra.gmra.mxu0 %v2424_v24  ;;  %v794_v50 = vld [vmem:[#allocation6 + $0x150] sm:$0xff] }
  0x95   :  { %683 = vmatpush1.msra.mxu0 %v236_v9  ;;  %1916 = vmatprep.mubr.msk.f32.mxu0 %vm394_vm0, %v2415_v26  ;;  %v270_v9 = vld [vmem:[#allocation3 + $0x588] sm:$0xff] }
  0x96   :  { %684 = vmatprep.subr.mxu0 %v2294_v12  ;;  %660 = vmatpush2.msra.mxu1 %v306_v54  ;;  %v769_v54 = vld [vmem:[#allocation6 + $0x88] sm:$0xff] }
  0x97   :  { %685 = vmatpush1.msra.mxu0 %v227_v13  ;;  %661 = vmatprep.subr.mxu1 %v298_v56  ;;  %v788_v56 = vld [vmem:[#allocation6 + $0x120] sm:$0xff] }
  0x98   :  { %686 = vmatprep.subr.mxu0 %v2294_v12  ;;  %662 = vmatpush2.msra.mxu1 %v297_v58  ;;  %v785_v58 = vld [vmem:[#allocation6 + $0x108] sm:$0xff] }
  0x99   :  { %687 = vmatpush1.msra.mxu0 %v218_v16  ;;  %663 = vmatprep.subr.mxu1 %v289_v60  ;;  %v101_v16 = vld [vmem:[#allocation3 + $0x40] sm:$0xff]  ;;  %v783_v60 = vld [vmem:[#allocation6 + $0xf8] sm:$0xff] }
  0x9a   :  { %688 = vmatprep.subr.mxu0 %v2294_v12  ;;  %664 = vmatpush2.msra.mxu1 %v288_v63  ;;  %v780_v63 = vld [vmem:[#allocation6 + $0xe0] sm:$0xff] }
  0x9b   :  { %689 = vmatpush1.msra.mxu0 %v209_v19  ;;  %665 = vmatprep.subr.mxu1 %v280_v2  ;;  %v344_v19 = vld [vmem:[#allocation3 + $0x7d8] sm:$0xff]  ;;  %v777_v2 = vld [vmem:[#allocation6 + $0xc8] sm:$0xff] }
  0x9c   :  { %690 = vmatprep.subr.mxu0 %v2294_v12  ;;  %v1568_v5 = vpop.permute.xlu1 %1567  ;;  %666 = vmatpush2.msra.mxu1 %v279_v4  ;;  %v754_v4 = vld [vmem:[#allocation6 + $0x10] sm:$0xff] }
  0x9d   :  { %691 = vmatpush1.msra.mxu0 %v200_v23  ;;  %667 = vmatprep.subr.mxu1 %v271_v7  ;;  %v244_v23 = vld [vmem:[#allocation3 + $0x4b8] sm:$0xff] }
  0x9e   :  { %692 = vmatprep.subr.mxu0 %v2294_v12  ;;  %668 = vmatpush2.msra.mxu1 %v270_v9  ;;  %v771_v7 = vld [vmem:[#allocation6 + $0x98] sm:$0xff]  ;;  %v770_v9 = vld [vmem:[#allocation6 + $0x90] sm:$0xff] }
  0x9f   :  { %693 = vmatpush1.msra.mxu0 %v191_v29  ;;  %669 = vmatprep.subr.mxu1 %v262_v11  ;;  %v317_v29 = vld [vmem:[#allocation3 + $0x700] sm:$0xff]  ;;  %v1019_v11 = vld [vmem:[#allocation6 + $0x2f8] sm:$0xff] }
  0xa0   :  { %694 = vmatprep.subr.mxu0 %v2294_v12  ;;  %670 = vmatpush2.msra.mxu1 %v261_v15  ;;  %v767_v15 = vld [vmem:[#allocation6 + $0x78] sm:$0xff] }
  0xa1   :  { %695 = vmatpush1.msra.mxu0 %v182_v34  ;;  %671 = vmatprep.subr.mxu1 %v253_v17  ;;  %v299_v34 = vld [vmem:[#allocation3 + $0x670] sm:$0xff]  ;;  %v765_v17 = vld [vmem:[#allocation6 + $0x68] sm:$0xff] }
  0xa2   :  { %696 = vmatprep.subr.mxu0 %v2294_v12  ;;  %672 = vmatpush2.msra.mxu1 %v252_v20  ;;  %v1013_v20 = vld [vmem:[#allocation6 + $0x2c8] sm:$0xff] }
  0xa3   :  { %697 = vmatpush1.msra.mxu0 %v173_v38  ;;  %673 = vmatprep.subr.mxu1 %v244_v23  ;;  %v787_v38 = vld [vmem:[#allocation6 + $0x118] sm:$0xff]  ;;  %v761_v23 = vld [vmem:[#allocation6 + $0x48] sm:$0xff] }
  0xa4   :  { %v1510_v36 = vpop.permute.xlu0 %1509  ;;  %698 = vmatprep.subr.mxu0 %v2294_v12  ;;  %674 = vmatpush2.msra.mxu1 %v243_v27  ;;  %v759_v27 = vld [vmem:[#allocation6 + $0x38] sm:$0xff] }
  0xa5   :  { %v1516_v41 = vsub.f32 %v1510_v36, %v1515_v31  ;;  %699 = vmatpush1.msra.mxu0 %v164_v44  ;;  %1915 = vmatprep.mubr.msk.f32.mxu1 %vm394_vm0, %v2415_v26  ;;  %v308_v31 = vld [vmem:[#allocation3 + $0x6b8] sm:$0xff]  ;;  %v290_v26 = vld [vmem:[#allocation3 + $0x628] sm:$0xff]  ;;  %v790_v36 = vld [vmem:[#allocation6 + $0x130] sm:$0xff] }
  0xa6   :  { %700 = vmatprep.subr.mxu0 %v2294_v12  ;;  %2003 = vmatprep.subr.mxu1 %v2294_v12  ;;  %v778_v44 = vld [vmem:[#allocation6 + $0xd0] sm:$0xff] }
  0xa7   :  { %v1526_v51 = vmul.f32 %v1516_v41, %v1516_v41  ;;  %701 = vmatpush1.msra.mxu0 %v155_v49  ;;  %676 = vmatmul.mubr.f32.vlgmr.msra.gmra.mxu1 %v2424_v24  ;;  %v263_v41 = vld [vmem:[#allocation3 + $0x550] sm:$0xff]  ;;  %v795_v49 = vld [vmem:[#allocation6 + $0x158] sm:$0xff] }
  0xa8   :  { %702 = vmatprep.subr.mxu0 %v2294_v12  ;;  %2004 = vmatpush3.msra.mxu1 %v799_v30  ;;  %v756_v30 = vld [vmem:[#allocation6 + $0x20] sm:$0xff] }
  0xa9   :  { %v1519_v48 = vpop.permute.xlu0 %1518  ;;  %v1531_v61 = vmul.f32 %v1530_v47, %v1526_v51  ;;  %703 = vmatpush1.msra.mxu0 %v146_v55  ;;  %2005 = vmatprep.subr.mxu1 %v2294_v12  ;;  %v798_v47 = vld [vmem:[#allocation6 + $0x170] sm:$0xff]  ;;  %v772_v51 = vld [vmem:[#allocation6 + $0xa0] sm:$0xff]  ;;  %v789_v55 = vld [vmem:[#allocation6 + $0x128] sm:$0xff] }
  0xaa   :  { %v1525_v53 = vsub.f32 %v1519_v48, %v1524_v42  ;;  %704 = vmatprep.subr.mxu0 %v2294_v12  ;;  %2006 = vmatpush3.msra.mxu1 %v796_v33  ;;  %v781_v42 = vld [vmem:[#allocation6 + $0xe8] sm:$0xff]  ;;  %v1004_v33 = vld [vmem:[#allocation6 + $0x280] sm:$0xff] }
  0xab   :  { %705 = vmatpush1.msra.mxu0 %v137_v59  ;;  %2007 = vmatprep.subr.mxu1 %v2294_v12  ;;  %v797_v48 = vld [vmem:[#allocation6 + $0x168] sm:$0xff]  ;;  %v763_v59 = vld [vmem:[#allocation6 + $0x58] sm:$0xff] }
  0xac   :  { %v1532_v57 = vmul.f32 %v1525_v53, %v1525_v53  ;;  %706 = vmatprep.subr.mxu0 %v2294_v12  ;;  %2008 = vmatpush3.msra.mxu1 %v793_v35  ;;  %v791_v53 = vld [vmem:[#allocation6 + $0x138] sm:$0xff]  ;;  %v752_v35 = vld [vmem:[#allocation6] sm:$0xff] }
  0xad   :  { %707 = vmatpush1.msra.mxu0 %v128_v0  ;;  %2009 = vmatprep.subr.mxu1 %v2294_v12  ;;  %v779_v0 = vld [vmem:[#allocation6 + $0xd8] sm:$0xff] }
  0xae   :  { %v1537_v62 = vmul.f32 %v1536_v52, %v1532_v57  ;;  %708 = vmatprep.subr.mxu0 %v2294_v12  ;;  %2010 = vmatpush3.msra.mxu1 %v790_v36  ;;  %v792_v52 = vld [vmem:[#allocation6 + $0x140] sm:$0xff]  ;;  %v766_v57 = vld [vmem:[#allocation6 + $0x70] sm:$0xff] }
  0xaf   :  { %709 = vmatpush1.msra.mxu0 %v119_v6  ;;  %2011 = vmatprep.subr.mxu1 %v2294_v12  ;;  %v773_v6 = vld [vmem:[#allocation6 + $0xa8] sm:$0xff]  ;;  %v1018_v36 = vld [vmem:[#allocation6 + $0x2f0] sm:$0xff] }
  0xb0   :  { %v1538_v3 = vadd.f32 %v1537_v62, %v1531_v61  ;;  %710 = vmatprep.subr.mxu0 %v2294_v12  ;;  %2012 = vmatpush3.msra.mxu1 %v787_v38  ;;  %v782_v61 = vld [vmem:[#allocation6 + $0xf0] sm:$0xff]  ;;  %v760_v62 = vld [vmem:[#allocation6 + $0x40] sm:$0xff]  ;;  %v1015_v38 = vld [vmem:[#allocation6 + $0x2d8] sm:$0xff] }
  0xb1   :  { %711 = vmatpush1.msra.mxu0 %v110_v10  ;;  %2013 = vmatprep.subr.mxu1 %v2294_v12  ;;  %v2513_v10 = vld [vmem:[%s3014_s4] sm:$0xff] }
  0xb2   :  { %v2467_v8 = vmul.f32 %v1927_v1, %v1538_v3  ;;  %712 = vmatprep.subr.mxu0 %v2294_v12  ;;  %2014 = vmatpush3.msra.mxu1 %v784_v40  ;;  %v757_v1 = vld [vmem:[#allocation6 + $0x28] sm:$0xff]  ;;  %v776_v3 = vld [vmem:[#allocation6 + $0xc0] sm:$0xff]  ;;  %v998_v40 = vld [vmem:[#allocation6 + $0x250] sm:$0xff] }
  0xb3   :  { %713 = vmatpush1.msra.mxu0 %v101_v16  ;;  %2015 = vmatprep.subr.mxu1 %v2294_v12  ;;  %v1016_v16 = vld [vmem:[#allocation6 + $0x2e0] sm:$0xff] }
  0xb4   :  { %v1570_v13 = vadd.f32 %v1568_v5, %v2467_v8  ;;  %722 = vmatprep.subr.mxu0 %v2294_v12  ;;  %2016 = vmatpush3.msra.mxu1 %v781_v42  ;;  %v774_v5 = vld [vmem:[#allocation6 + $0xb0] sm:$0xff]  ;;  %v1011_v42 = vld [vmem:[#allocation6 + $0x2b8] sm:$0xff] }
  0xb5   :  { %723 = vmatpush2.msra.mxu0 %v344_v19  ;;  %2017 = vmatprep.subr.mxu1 %v2294_v12  ;;  %v764_v19 = vld [vmem:[#allocation6 + $0x60] sm:$0xff] }
  0xb6   :  { %v2472_v18 = vmul.f32 10.0, %v1570_v13  ;;  %724 = vmatprep.subr.mxu0 %v2294_v12  ;;  %2018 = vmatpush3.msra.mxu1 %v778_v44  ;;  %v768_v13 = vld [vmem:[#allocation6 + $0x80] sm:$0xff]  ;;  %v1009_v44 = vld [vmem:[#allocation6 + $0x2a8] sm:$0xff] }
  0xb7   :  { %725 = vmatpush2.msra.mxu0 %v335_v25  ;;  %2019 = vmatprep.subr.mxu1 %v2294_v12  ;;  %v1010_v25 = vld [vmem:[#allocation6 + $0x2b0] sm:$0xff] }
  0xb8   :  { %v1576_v22 = vsel %vm1550_vm1, %v2472_v18, -inf  ;;  %726 = vmatprep.subr.mxu0 %v2294_v12  ;;  %2020 = vmatpush3.msra.mxu1 %v775_v46  ;;  %v992_v46 = vld [vmem:[#allocation6 + $0x220] sm:$0xff] }
  0xb9   :  { %1577 = vmax.xlane.f32.xlu1 %v1576_v22  ;;  %727 = vmatpush2.msra.mxu0 %v326_v28  ;;  %v762_v22 = vld [vmem:[#allocation6 + $0x50] sm:$0xff] }
  0xba   :  { %728 = vmatprep.subr.mxu0 %v2294_v12  ;;  %2021 = vmatprep.subr.mxu1 %v2294_v12  ;;  %v758_v28 = vld [vmem:[#allocation6 + $0x30] sm:$0xff] }
  0xbb   :  { %729 = vmatpush2.msra.mxu0 %v317_v29  ;;  %2022 = vmatpush3.msra.mxu1 %v772_v51  ;;  %v1007_v29 = vld [vmem:[#allocation6 + $0x298] sm:$0xff]  ;;  %v1002_v51 = vld [vmem:[#allocation6 + $0x270] sm:$0xff] }
  0xbc   :  { %730 = vmatprep.subr.mxu0 %v2294_v12  ;;  %2023 = vmatprep.subr.mxu1 %v2294_v12 }
  0xbd   :  { %731 = vmatpush2.msra.mxu0 %v308_v31  ;;  %2024 = vmatpush3.msra.mxu1 %v769_v54  ;;  %v755_v31 = vld [vmem:[#allocation6 + $0x18] sm:$0xff] }
  0xbe   :  { %732 = vmatprep.subr.mxu0 %v2294_v12  ;;  %2025 = vmatprep.subr.mxu1 %v2294_v12  ;;  %v999_v54 = vld [vmem:[#allocation6 + $0x258] sm:$0xff] }
  0xbf   :  { %733 = vmatpush2.msra.mxu0 %v299_v34  ;;  %2026 = vmatpush3.msra.mxu1 %v766_v57  ;;  %v753_v34 = vld [vmem:[#allocation6 + $0x8] sm:$0xff]  ;;  %v996_v57 = vld [vmem:[#allocation6 + $0x240] sm:$0xff] }
  0xc0   :  { %734 = vmatprep.subr.mxu0 %v2294_v12  ;;  %2027 = vmatprep.subr.mxu1 %v2294_v12 }
  0xc1   :  { %735 = vmatpush2.msra.mxu0 %v290_v26  ;;  %2028 = vmatpush3.msra.mxu1 %v763_v59  ;;  %v1001_v26 = vld [vmem:[#allocation6 + $0x268] sm:$0xff] }
  0xc2   :  { %736 = vmatprep.subr.mxu0 %v2294_v12  ;;  %2029 = vmatprep.subr.mxu1 %v2294_v12  ;;  %v993_v59 = vld [vmem:[#allocation6 + $0x228] sm:$0xff] }
  0xc3   :  { %737 = vmatpush2.msra.mxu0 %v281_v37  ;;  %2030 = vmatpush3.msra.mxu1 %v760_v62  ;;  %v1017_v37 = vld [vmem:[#allocation6 + $0x2e8] sm:$0xff]  ;;  %v990_v62 = vld [vmem:[#allocation6 + $0x210] sm:$0xff] }
  0xc4   :  { %738 = vmatprep.subr.mxu0 %v2294_v12  ;;  %2031 = vmatprep.subr.mxu1 %v2294_v12 }
  0xc5   :  { %739 = vmatpush2.msra.mxu0 %v272_v39  ;;  %2032 = vmatpush3.msra.mxu1 %v757_v1  ;;  %v1014_v39 = vld [vmem:[#allocation6 + $0x2d0] sm:$0xff]  ;;  %v987_v1 = vld [vmem:[#allocation6 + $0x1f8] sm:$0xff] }
  0xc6   :  { %740 = vmatprep.subr.mxu0 %v2294_v12  ;;  %2033 = vmatprep.subr.mxu1 %v2294_v12 }
  0xc7   :  { %741 = vmatpush2.msra.mxu0 %v263_v41  ;;  %2034 = vmatpush3.msra.mxu1 %v754_v4  ;;  %v1012_v41 = vld [vmem:[#allocation6 + $0x2c0] sm:$0xff]  ;;  %v2539_v4 = vld [vmem:[%s3014_s4 + $0x8] sm:$0xff] }
  0xc8   :  { %742 = vmatprep.subr.mxu0 %v2294_v12  ;;  %2035 = vmatprep.mubr.msk.f32.mxu1 %vm2295_vm2, %v2294_v12 }
  0xc9   :  { %743 = vmatpush2.msra.mxu0 %v254_v43  ;;  %2036 = vmatmul.mubr.f32.vlgmr.msra.gmra.mxu1 %v2513_v10  ;;  %v995_v43 = vld [vmem:[#allocation6 + $0x238] sm:$0xff] }
  0xca   :  { %744 = vmatprep.subr.mxu0 %v2294_v12  ;;  %2038 = vmatprep.subr.mxu1 %v2294_v12 }
  0xcb   :  { %745 = vmatpush2.msra.mxu0 %v245_v45  ;;  %2039 = vmatpush3.msra.mxu1 %v1019_v11  ;;  %v1008_v45 = vld [vmem:[#allocation6 + $0x2a0] sm:$0xff]  ;;  %v979_v11 = vld [vmem:[#allocation6 + $0x1b8] sm:$0xff] }
  0xcc   :  { %800 = vmatprep.subr.mxu0 %v798_v47  ;;  %747 = vmatmul.mubr.f32.vlgmr.msra.gmra.mxu0 %v2424_v24  ;;  %v786_v24 = vld [vmem:[#allocation6 + $0x110] sm:$0xff] }
  0xcd   :  { %801 = vmatpush1.msra.mxu0 %v797_v48  ;;  %864 = vmatprep.mubr.f32.mxu0 %v2294_v12  ;;  %v1006_v47 = vld [vmem:[#allocation6 + $0x290] sm:$0xff]  ;;  %v1005_v48 = vld [vmem:[#allocation6 + $0x288] sm:$0xff] }
  0xce   :  { %802 = vmatprep.subr.mxu0 %v795_v49  ;;  %2040 = vmatprep.subr.mxu1 %v2294_v12  ;;  %v989_v49 = vld [vmem:[#allocation6 + $0x208] sm:$0xff] }
  0xcf   :  { %803 = vmatpush1.msra.mxu0 %v794_v50  ;;  %2041 = vmatpush3.msra.mxu1 %v1016_v16  ;;  %v1003_v50 = vld [vmem:[#allocation6 + $0x278] sm:$0xff]  ;;  %v976_v16 = vld [vmem:[#allocation6 + $0x1a0] sm:$0xff] }
  0xd0   :  { %804 = vmatprep.subr.mxu0 %v792_v52  ;;  %2042 = vmatprep.subr.mxu1 %v2294_v12  ;;  %v986_v52 = vld [vmem:[#allocation6 + $0x1f0] sm:$0xff] }
  0xd1   :  { %805 = vmatpush1.msra.mxu0 %v791_v53  ;;  %2043 = vmatpush3.msra.mxu1 %v1013_v20  ;;  %v1000_v53 = vld [vmem:[#allocation6 + $0x260] sm:$0xff]  ;;  %v973_v20 = vld [vmem:[#allocation6 + $0x188] sm:$0xff] }
  0xd2   :  { %806 = vmatprep.subr.mxu0 %v789_v55  ;;  %2044 = vmatprep.subr.mxu1 %v2294_v12  ;;  %v983_v55 = vld [vmem:[#allocation6 + $0x1d8] sm:$0xff] }
  0xd3   :  { %807 = vmatpush1.msra.mxu0 %v788_v56  ;;  %2045 = vmatpush3.msra.mxu1 %v1010_v25  ;;  %v997_v56 = vld [vmem:[#allocation6 + $0x248] sm:$0xff]  ;;  %v1238_v25 = vld [vmem:[#allocation6 + $0x470] sm:$0xff] }
  0xd4   :  { %808 = vmatprep.subr.mxu0 %v786_v24  ;;  %2046 = vmatprep.subr.mxu1 %v2294_v12  ;;  %v980_v24 = vld [vmem:[#allocation6 + $0x1c0] sm:$0xff] }
  0xd5   :  { %809 = vmatpush1.msra.mxu0 %v785_v58  ;;  %2047 = vmatpush3.msra.mxu1 %v1007_v29  ;;  %v994_v58 = vld [vmem:[#allocation6 + $0x230] sm:$0xff] }
  0xd6   :  { %810 = vmatprep.subr.mxu0 %v783_v60  ;;  %2048 = vmatprep.subr.mxu1 %v2294_v12  ;;  %v977_v60 = vld [vmem:[#allocation6 + $0x1a8] sm:$0xff]  ;;  %v1234_v29 = vld [vmem:[#allocation6 + $0x450] sm:$0xff] }
  0xd7   :  { %811 = vmatpush1.msra.mxu0 %v782_v61  ;;  %2049 = vmatpush3.msra.mxu1 %v1004_v33  ;;  %v991_v61 = vld [vmem:[#allocation6 + $0x218] sm:$0xff] }
  0xd8   :  { %812 = vmatprep.subr.mxu0 %v780_v63  ;;  %2050 = vmatprep.subr.mxu1 %v2294_v12  ;;  %v974_v63 = vld [vmem:[#allocation6 + $0x190] sm:$0xff]  ;;  %v1231_v33 = vld [vmem:[#allocation6 + $0x438] sm:$0xff] }
  0xd9   :  { %813 = vmatpush1.msra.mxu0 %v779_v0  ;;  %2051 = vmatpush3.msra.mxu1 %v1001_v26  ;;  %v988_v0 = vld [vmem:[#allocation6 + $0x200] sm:$0xff] }
  0xda   :  { %814 = vmatprep.subr.mxu0 %v777_v2  ;;  %2052 = vmatprep.subr.mxu1 %v2294_v12  ;;  %v985_v2 = vld [vmem:[#allocation6 + $0x1e8] sm:$0xff]  ;;  %v1228_v26 = vld [vmem:[#allocation6 + $0x420] sm:$0xff] }
  0xdb   :  { %815 = vmatpush1.msra.mxu0 %v776_v3  ;;  %2053 = vmatpush3.msra.mxu1 %v998_v40  ;;  %v984_v3 = vld [vmem:[#allocation6 + $0x1e0] sm:$0xff]  ;;  %v1223_v40 = vld [vmem:[#allocation6 + $0x3f8] sm:$0xff] }
  0xdc   :  { %816 = vmatprep.subr.mxu0 %v774_v5  ;;  %2054 = vmatprep.subr.mxu1 %v2294_v12  ;;  %v1239_v5 = vld [vmem:[#allocation6 + $0x478] sm:$0xff] }
  0xdd   :  { %817 = vmatpush1.msra.mxu0 %v773_v6  ;;  %2055 = vmatpush3.msra.mxu1 %v995_v43  ;;  %v982_v6 = vld [vmem:[#allocation6 + $0x1d0] sm:$0xff]  ;;  %v1220_v43 = vld [vmem:[#allocation6 + $0x3e0] sm:$0xff] }
  0xde   :  { %818 = vmatprep.subr.mxu0 %v771_v7  ;;  %2056 = vmatprep.subr.mxu1 %v2294_v12  ;;  %v981_v7 = vld [vmem:[#allocation6 + $0x1c8] sm:$0xff] }
  0xdf   :  { %819 = vmatpush1.msra.mxu0 %v770_v9  ;;  %2057 = vmatpush3.msra.mxu1 %v992_v46  ;;  %v1236_v9 = vld [vmem:[#allocation6 + $0x460] sm:$0xff]  ;;  %v1217_v46 = vld [vmem:[#allocation6 + $0x3c8] sm:$0xff] }
  0xe0   :  { %820 = vmatprep.subr.mxu0 %v768_v13  ;;  %2058 = vmatprep.subr.mxu1 %v2294_v12  ;;  %v978_v13 = vld [vmem:[#allocation6 + $0x1b0] sm:$0xff] }
  0xe1   :  { %821 = vmatpush1.msra.mxu0 %v767_v15  ;;  %2059 = vmatpush3.msra.mxu1 %v989_v49  ;;  %v1233_v15 = vld [vmem:[#allocation6 + $0x448] sm:$0xff]  ;;  %v1214_v49 = vld [vmem:[#allocation6 + $0x3b0] sm:$0xff] }
  0xe2   :  { %822 = vmatprep.subr.mxu0 %v765_v17  ;;  %2060 = vmatprep.subr.mxu1 %v2294_v12  ;;  %v975_v17 = vld [vmem:[#allocation6 + $0x198] sm:$0xff] }
  0xe3   :  { %823 = vmatpush1.msra.mxu0 %v764_v19  ;;  %2061 = vmatpush3.msra.mxu1 %v986_v52  ;;  %v1230_v19 = vld [vmem:[#allocation6 + $0x430] sm:$0xff]  ;;  %v1211_v52 = vld [vmem:[#allocation6 + $0x398] sm:$0xff] }
  0xe4   :  { %824 = vmatprep.subr.mxu0 %v762_v22  ;;  %2062 = vmatprep.subr.mxu1 %v2294_v12  ;;  %v972_v22 = vld [vmem:[#allocation6 + $0x180] sm:$0xff] }
  0xe5   :  { %825 = vmatpush1.msra.mxu0 %v761_v23  ;;  %2063 = vmatpush3.msra.mxu1 %v983_v55  ;;  %v1227_v23 = vld [vmem:[#allocation6 + $0x418] sm:$0xff]  ;;  %v1208_v55 = vld [vmem:[#allocation6 + $0x380] sm:$0xff] }
  0xe6   :  { %826 = vmatprep.subr.mxu0 %v759_v27  ;;  %2064 = vmatprep.subr.mxu1 %v2294_v12  ;;  %v1237_v27 = vld [vmem:[#allocation6 + $0x468] sm:$0xff] }
  0xe7   :  { %827 = vmatpush1.msra.mxu0 %v758_v28  ;;  %2065 = vmatpush3.msra.mxu1 %v980_v24  ;;  %v1235_v28 = vld [vmem:[#allocation6 + $0x458] sm:$0xff]  ;;  %v1205_v24 = vld [vmem:[#allocation6 + $0x368] sm:$0xff] }
  0xe8   :  { %828 = vmatprep.subr.mxu0 %v756_v30  ;;  %2066 = vmatprep.subr.mxu1 %v2294_v12  ;;  %v1224_v30 = vld [vmem:[#allocation6 + $0x400] sm:$0xff] }
  0xe9   :  { %829 = vmatpush1.msra.mxu0 %v755_v31  ;;  %2067 = vmatpush3.msra.mxu1 %v977_v60  ;;  %v1232_v31 = vld [vmem:[#allocation6 + $0x440] sm:$0xff]  ;;  %v1202_v60 = vld [vmem:[#allocation6 + $0x350] sm:$0xff] }
  0xea   :  { %830 = vmatprep.subr.mxu0 %v753_v34  ;;  %2068 = vmatprep.subr.mxu1 %v2294_v12  ;;  %v1221_v34 = vld [vmem:[#allocation6 + $0x3e8] sm:$0xff] }
  0xeb   :  { %831 = vmatpush1.msra.mxu0 %v752_v35  ;;  %2069 = vmatpush3.msra.mxu1 %v974_v63  ;;  %v1229_v35 = vld [vmem:[#allocation6 + $0x428] sm:$0xff]  ;;  %v1198_v63 = vld [vmem:[#allocation6 + $0x330] sm:$0xff] }
  0xec   :  { %865 = vmatmul.mubr.f32.vlgmr.msra.gmra.mxu0 %v2513_v10  ;;  %1020 = vmatprep.subr.mxu0 %v1018_v36  ;;  %v1218_v36 = vld [vmem:[#allocation6 + $0x3d0] sm:$0xff] }
  0xed   :  { %1021 = vmatpush1.msra.mxu0 %v1017_v37  ;;  %1084 = vmatprep.mubr.f32.mxu0 %v2294_v12  ;;  %v1226_v37 = vld [vmem:[#allocation6 + $0x410] sm:$0xff] }
  0xee   :  { %1022 = vmatprep.subr.mxu0 %v1015_v38  ;;  %2070 = vmatprep.mubr.msk.f32.mxu1 %vm2295_vm2, %v2294_v12  ;;  %v1225_v38 = vld [vmem:[#allocation6 + $0x408] sm:$0xff] }
  0xef   :  { %1023 = vmatpush1.msra.mxu0 %v1014_v39  ;;  %2071 = vmatmul.mubr.f32.vlgmr.msra.gmra.mxu1 %v2539_v4  ;;  %v1215_v39 = vld [vmem:[#allocation6 + $0x3b8] sm:$0xff] }
  0xf0   :  { %1024 = vmatprep.subr.mxu0 %v1012_v41  ;;  %2073 = vmatprep.subr.mxu1 %v2294_v12  ;;  %v1222_v41 = vld [vmem:[#allocation6 + $0x3f0] sm:$0xff] }
  0xf1   :  { %1025 = vmatpush1.msra.mxu0 %v1011_v42  ;;  %2074 = vmatpush3.msra.mxu1 %v1239_v5  ;;  %v1212_v42 = vld [vmem:[#allocation6 + $0x3a0] sm:$0xff] }
  0xf2   :  { %1026 = vmatprep.subr.mxu0 %v1009_v44  ;;  %2075 = vmatprep.subr.mxu1 %v2294_v12  ;;  %v1219_v44 = vld [vmem:[#allocation6 + $0x3d8] sm:$0xff]  ;;  %v1192_v5 = vld [vmem:[#allocation6 + $0x300] sm:$0xff] }
  0xf3   :  { %1027 = vmatpush1.msra.mxu0 %v1008_v45  ;;  %2076 = vmatpush3.msra.mxu1 %v1236_v9  ;;  %v1209_v45 = vld [vmem:[#allocation6 + $0x388] sm:$0xff] }
  0xf4   :  { %1028 = vmatprep.subr.mxu0 %v1006_v47  ;;  %2077 = vmatprep.subr.mxu1 %v2294_v12  ;;  %v1216_v47 = vld [vmem:[#allocation6 + $0x3c0] sm:$0xff] }
  0xf5   :  { %1029 = vmatpush1.msra.mxu0 %v1005_v48  ;;  %2078 = vmatpush3.msra.mxu1 %v1233_v15  ;;  %v1206_v48 = vld [vmem:[#allocation6 + $0x370] sm:$0xff]  ;;  %v1598_v15 = vld [vmem:[%s2997_s13 + $0x18] sm:$0xff] }
  0xf6   :  { %1030 = vmatprep.subr.mxu0 %v1003_v50  ;;  %2079 = vmatprep.subr.mxu1 %v2294_v12  ;;  %v1213_v50 = vld [vmem:[#allocation6 + $0x3a8] sm:$0xff] }
  0xf7   :  { %1031 = vmatpush1.msra.mxu0 %v1002_v51  ;;  %2080 = vmatpush3.msra.mxu1 %v1230_v19  ;;  %v1203_v51 = vld [vmem:[#allocation6 + $0x358] sm:$0xff] }
  0xf8   :  { %1032 = vmatprep.subr.mxu0 %v1000_v53  ;;  %2081 = vmatprep.subr.mxu1 %v2294_v12  ;;  %v1210_v53 = vld [vmem:[#allocation6 + $0x390] sm:$0xff]  ;;  %v1596_v19 = vld [vmem:[%s2997_s13 + $0x8] sm:$0xff] }
  0xf9   :  { %1033 = vmatpush1.msra.mxu0 %v999_v54  ;;  %2082 = vmatpush3.msra.mxu1 %v1227_v23  ;;  %v1200_v54 = vld [vmem:[#allocation6 + $0x340] sm:$0xff]  ;;  %v1595_v23 = vld [vmem:[%s2997_s13] sm:$0xff] }
  0xfa   :  { %1034 = vmatprep.subr.mxu0 %v997_v56  ;;  %2083 = vmatprep.subr.mxu1 %v2294_v12  ;;  %v1207_v56 = vld [vmem:[#allocation6 + $0x378] sm:$0xff] }
  0xfb   :  { %1035 = vmatpush1.msra.mxu0 %v996_v57  ;;  %2084 = vmatpush3.msra.mxu1 %v1224_v30  ;;  %v1197_v57 = vld [vmem:[#allocation6 + $0x328] sm:$0xff]  ;;  %v1419_v30 = vld [vmem:[%s2992_s8 + $0x40] sm:$0xff] }
  0xfc   :  { %1036 = vmatprep.subr.mxu0 %v994_v58  ;;  %2085 = vmatprep.subr.mxu1 %v2294_v12  ;;  %v1204_v58 = vld [vmem:[#allocation6 + $0x360] sm:$0xff] }
  0xfd   :  { %1037 = vmatpush1.msra.mxu0 %v993_v59  ;;  %2086 = vmatpush3.msra.mxu1 %v1221_v34  ;;  %v1194_v59 = vld [vmem:[#allocation6 + $0x310] sm:$0xff]  ;;  %v1416_v34 = vld [vmem:[%s2992_s8 + $0x28] sm:$0xff] }
  0xfe   :  { %1038 = vmatprep.subr.mxu0 %v991_v61  ;;  %2087 = vmatprep.subr.mxu1 %v2294_v12  ;;  %v1201_v61 = vld [vmem:[#allocation6 + $0x348] sm:$0xff] }
  0xff   :  { %1039 = vmatpush1.msra.mxu0 %v990_v62  ;;  %2088 = vmatpush3.msra.mxu1 %v1218_v36  ;;  %v1199_v62 = vld [vmem:[#allocation6 + $0x338] sm:$0xff]  ;;  %v1414_v36 = vld [vmem:[%s2992_s8 + $0x18] sm:$0xff] }
 0x100   :  { %1040 = vmatprep.subr.mxu0 %v988_v0  ;;  %2089 = vmatprep.subr.mxu1 %v2294_v12  ;;  %v2565_v0 = vld [vmem:[%s3014_s4 + $0x10] sm:$0xff] }
 0x101   :  { %1041 = vmatpush1.msra.mxu0 %v987_v1  ;;  %2090 = vmatpush3.msra.mxu1 %v1215_v39  ;;  %v1196_v1 = vld [vmem:[#allocation6 + $0x320] sm:$0xff]  ;;  %v1412_v39 = vld [vmem:[%s2992_s8 + $0x8] sm:$0xff] }
 0x102   :  { %1042 = vmatprep.subr.mxu0 %v985_v2  ;;  %2091 = vmatprep.subr.mxu1 %v2294_v12  ;;  %v1195_v2 = vld [vmem:[#allocation6 + $0x318] sm:$0xff] }
 0x103   :  { %1043 = vmatpush1.msra.mxu0 %v984_v3  ;;  %2092 = vmatpush3.msra.mxu1 %v1212_v42  ;;  %v1193_v3 = vld [vmem:[#allocation6 + $0x308] sm:$0xff] }
 0x104   :  { %1044 = vmatprep.subr.mxu0 %v982_v6  ;;  %2093 = vmatprep.subr.mxu1 %v2294_v12 }
 0x105   :  { %1045 = vmatpush1.msra.mxu0 %v981_v7  ;;  %2094 = vmatpush3.msra.mxu1 %v1209_v45 }
 0x106   :  { %1046 = vmatprep.subr.mxu0 %v979_v11  ;;  %2095 = vmatprep.subr.mxu1 %v2294_v12 }
 0x107   :  { %1047 = vmatpush1.msra.mxu0 %v978_v13  ;;  %2096 = vmatpush3.msra.mxu1 %v1206_v48 }
 0x108   :  { %1048 = vmatprep.subr.mxu0 %v976_v16  ;;  %2097 = vmatprep.subr.mxu1 %v2294_v12  ;;  %v1426_v16 = vld [vmem:[%s2992_s8 + $0x78] sm:$0xff] }
 0x109   :  { %1049 = vmatpush1.msra.mxu0 %v975_v17  ;;  %2098 = vmatpush3.msra.mxu1 %v1203_v51  ;;  %v1425_v17 = vld [vmem:[%s2992_s8 + $0x70] sm:$0xff] }
 0x10a   :  { %1050 = vmatprep.subr.mxu0 %v973_v20  ;;  %2099 = vmatprep.subr.mxu1 %v2294_v12  ;;  %v2601_v20 = vld [vmem:[%s3012_s20] sm:$0xff] }
 0x10b   :  { %1051 = vmatpush1.msra.mxu0 %v972_v22  ;;  %2100 = vmatpush3.msra.mxu1 %v1200_v54  ;;  %v1424_v22 = vld [vmem:[%s2992_s8 + $0x68] sm:$0xff] }
 0x10c   :  { %1085 = vmatmul.mubr.f32.vlgmr.msra.gmra.mxu0 %v2539_v4  ;;  %1240 = vmatprep.subr.mxu0 %v1238_v25  ;;  %v1423_v25 = vld [vmem:[%s2992_s8 + $0x60] sm:$0xff] }
 0x10d   :  { %1241 = vmatpush1.msra.mxu0 %v1237_v27  ;;  %1304 = vmatprep.mubr.f32.mxu0 %v2294_v12  ;;  %v1422_v27 = vld [vmem:[%s2992_s8 + $0x58] sm:$0xff] }
 0x10e   :  { %1242 = vmatprep.subr.mxu0 %v1235_v28  ;;  %2101 = vmatprep.subr.mxu1 %v2294_v12  ;;  %v1421_v28 = vld [vmem:[%s2992_s8 + $0x50] sm:$0xff] }
 0x10f   :  { %1243 = vmatpush1.msra.mxu0 %v1234_v29  ;;  %2102 = vmatpush3.msra.mxu1 %v1197_v57  ;;  %v1420_v29 = vld [vmem:[%s2992_s8 + $0x48] sm:$0xff] }
 0x110   :  { %1244 = vmatprep.subr.mxu0 %v1232_v31  ;;  %2103 = vmatprep.subr.mxu1 %v2294_v12  ;;  %v1418_v31 = vld [vmem:[%s2992_s8 + $0x38] sm:$0xff] }
 0x111   :  { %1245 = vmatpush1.msra.mxu0 %v1231_v33  ;;  %2104 = vmatpush3.msra.mxu1 %v1194_v59  ;;  %v1417_v33 = vld [vmem:[%s2992_s8 + $0x30] sm:$0xff] }
 0x112   :  { %1246 = vmatprep.subr.mxu0 %v1229_v35  ;;  %2105 = vmatprep.mubr.msk.f32.mxu1 %vm2295_vm2, %v2294_v12  ;;  %v1415_v35 = vld [vmem:[%s2992_s8 + $0x20] sm:$0xff] }
 0x113   :  { %1247 = vmatpush1.msra.mxu0 %v1228_v26  ;;  %2106 = vmatmul.mubr.f32.vlgmr.msra.gmra.mxu1 %v2565_v0 }
 0x114   :  { %1248 = vmatprep.subr.mxu0 %v1226_v37  ;;  %2143 = vmatprep.subr.mxu1 %v2294_v12  ;;  %v1413_v37 = vld [vmem:[%s2992_s8 + $0x10] sm:$0xff] }
 0x115   :  { %1249 = vmatpush1.msra.mxu0 %v1225_v38  ;;  %2151 = vmatprep.mubr.msk.f32.mxu1 %vm2295_vm2, %v2294_v12 }
 0x116   :  { %1250 = vmatprep.subr.mxu0 %v1223_v40  ;;  %2144 = vmatpush3.msra.mxu1 %v1598_v15 }
 0x117   :  { %1251 = vmatpush1.msra.mxu0 %v1222_v41  ;;  %2145 = vmatprep.subr.mxu1 %v2294_v12  ;;  %v1411_v41 = vld [vmem:[%s2992_s8] sm:$0xff] }
 0x118   :  { %1252 = vmatprep.subr.mxu0 %v1220_v43 }
 0x119   :  { %1253 = vmatpush1.msra.mxu0 %v1219_v44 }
 0x11a   :  { %1254 = vmatprep.subr.mxu0 %v1217_v46 }
 0x11b   :  { %1255 = vmatpush1.msra.mxu0 %v1216_v47 }
 0x11c   :  { %1256 = vmatprep.subr.mxu0 %v1214_v49  ;;  %v464_v26 = vpop.f32.mrf.mxu0 }
 0x11d   :  { %1257 = vmatpush1.msra.mxu0 %v1213_v50 }
 0x11e   :  { %1258 = vmatprep.subr.mxu0 %v1211_v52  ;;  %v466_v38 = vpop.f32.mrf.mxu0 }
 0x11f   :  { %1259 = vmatpush1.msra.mxu0 %v1210_v53 }
 0x120   :  { %1260 = vmatprep.subr.mxu0 %v1208_v55 }
 0x121   :  { %1261 = vmatpush1.msra.mxu0 %v1207_v56 }
 0x122   :  { %1262 = vmatprep.subr.mxu0 %v1205_v24 }
 0x123   :  { %1263 = vmatpush1.msra.mxu0 %v1204_v58 }
 0x124   :  { %1264 = vmatprep.subr.mxu0 %v1202_v60 }
 0x125   :  { %1265 = vmatpush1.msra.mxu0 %v1201_v61 }
 0x126   :  { %1266 = vmatprep.subr.mxu0 %v1199_v62  ;;  %v363_v62 = vsub.s32 3, %v2432_v14 }
 0x127   :  { %1267 = vmatpush1.msra.mxu0 %v1198_v63 }
 0x128   :  { %1268 = vmatprep.subr.mxu0 %v1196_v1 }
 0x129   :  { %1269 = vmatpush1.msra.mxu0 %v1195_v2  ;;  %v359_v2 = vsub.s32 2, %v2432_v14 }
 0x12a   :  { %1270 = vmatprep.subr.mxu0 %v1193_v3 }
 0x12b   :  { %1271 = vmatpush1.msra.mxu0 %v1192_v5  ;;  %v535_v44 = vpop.f32.mrf.mxu1 }
 0x12c   :  { %1305 = vmatmul.mubr.f32.vlgmr.msra.gmra.mxu0 %v2565_v0  ;;  %2108 = vmatprep.subr.mxu0 %v2294_v12 }
 0x12d   :  { %2140 = vmatprep.mubr.msk.f32.mxu0 %vm2295_vm2, %v2294_v12  ;;  %2109 = vmatpush3.msra.mxu0 %v1426_v16  ;;  %v537_v46 = vpop.f32.mrf.mxu1 }
 0x12e   :  { %2110 = vmatprep.subr.mxu0 %v2294_v12 }
 0x12f   :  { %2111 = vmatpush3.msra.mxu0 %v1425_v17 }
 0x130   :  { %2112 = vmatprep.subr.mxu0 %v2294_v12 }
 0x131   :  { %2113 = vmatpush3.msra.mxu0 %v1424_v22 }
 0x132   :  { %2114 = vmatprep.subr.mxu0 %v2294_v12 }
 0x133   :  { %2115 = vmatpush3.msra.mxu0 %v1423_v25 }
 0x134   :  { %2116 = vmatprep.subr.mxu0 %v2294_v12 }
 0x135   :  { %2117 = vmatpush3.msra.mxu0 %v1422_v27 }
 0x136   :  { %2118 = vmatprep.subr.mxu0 %v2294_v12 }
 0x137   :  { %2119 = vmatpush3.msra.mxu0 %v1421_v28 }
 0x138   :  { %2120 = vmatprep.subr.mxu0 %v2294_v12 }
 0x139   :  { %2121 = vmatpush3.msra.mxu0 %v1420_v29 }
 0x13a   :  { %2122 = vmatprep.subr.mxu0 %v2294_v12 }
 0x13b   :  { %2123 = vmatpush3.msra.mxu0 %v1419_v30 }
 0x13c   :  { %2124 = vmatprep.subr.mxu0 %v2294_v12 }
 0x13d   :  { %2125 = vmatpush3.msra.mxu0 %v1418_v31 }
 0x13e   :  { %2126 = vmatprep.subr.mxu0 %v2294_v12 }
 0x13f   :  { %2127 = vmatpush3.msra.mxu0 %v1417_v33 }
 0x140   :  { %2128 = vmatprep.subr.mxu0 %v2294_v12 }
 0x141   :  { %2129 = vmatpush3.msra.mxu0 %v1416_v34 }
 0x142   :  { %v1578_v6 = vpop.xlane.xlu1 %1577  ;;  %2130 = vmatprep.subr.mxu0 %v2294_v12 }
 0x143   :  { %v1580_v7 = vsub.f32 %v2472_v18, %v1578_v6  ;;  %v1597_v18 = vld [vmem:[%s2997_s13 + $0x10] sm:$0xff]  ;;  %2131 = vmatpush3.msra.mxu0 %v1415_v35  ;;  %v367_v6 = vsub.s32 4, %v2432_v14 }
 0x144   :  { %2146 = vmatpush3.msra.mxu1 %v1597_v18  ;;  %2132 = vmatprep.subr.mxu0 %v2294_v12 }
 0x145   :  { %v1583_v9 = vmul.f32 1.442695, %v1580_v7  ;;  %2147 = vmatprep.subr.mxu1 %v2294_v12  ;;  %2133 = vmatpush3.msra.mxu0 %v1414_v36  ;;  %v1919_v7 = vld [vmem:[%s2991_s7] ss:$0 sm:$0xff] }
 0x146   :  { %2148 = vmatpush3.msra.mxu1 %v1596_v19  ;;  %2134 = vmatprep.subr.mxu0 %v2294_v12 }
 0x147   :  { %2172 = vpow2.f32 %v1583_v9  ;;  %2149 = vmatprep.subr.mxu1 %v2294_v12  ;;  %2135 = vmatpush3.msra.mxu0 %v1413_v37 }
 0x148   :  { %2150 = vmatpush3.msra.mxu1 %v1595_v23  ;;  %2136 = vmatprep.subr.mxu0 %v2294_v12 }
 0x149   :  { %2137 = vmatpush3.msra.mxu0 %v1412_v39 }
 0x14a   :  { %2138 = vmatprep.subr.mxu0 %v2294_v12  ;;  %v2678_v12 = vld [vmem:[%s2990_s6] sm:$0xff] }
 0x14b   :  { %2139 = vmatpush3.msra.mxu0 %v1411_v41  ;;  %v352_v51 = vrot.slane %v2678_v12, %v2439_v21  ;;  %v356_v54 = vrot.slane %v2678_v12, %v2448_v32  ;;  %v364_v3 = vrot.slane %v2678_v12, %v363_v62  ;;  %v360_v9 = vrot.slane %v2678_v12, %v359_v2 }
 0x14c   :  { %v368_v18 = vrot.slane %v2678_v12, %v367_v6  ;;  %v375_v41 = vsub.s32 6, %v2432_v14 }
 0x14d   :  { %v465_v52 = vadd.f32 %v464_v26, %v352_v51  ;;  %v467_v24 = vadd.f32 %v466_v38, %v356_v54  ;;  %v536_v19 = vadd.f32 %v535_v44, %v360_v9  ;;  %v371_v51 = vsub.s32 5, %v2432_v14 }
 0x154   :  { %v2578_v11 = vpop.eup %2172  ;;  %v606_v40 = vpop.f32.mrf.mxu0 }
 0x155   :  { %v1588_v13 = vsel %vm1550_vm1, %v2578_v11, 0.0  ;;  %v607_v29 = vadd.f32 %v606_v40, %v368_v18 }
 0x156   :  { %1589 = vadd.xlane.f32.xlu0 %v1588_v13  ;;  %v2667_v42 = vpop.f32.mrf.mxu0  ;;  %v538_v13 = vadd.f32 %v537_v46, %v364_v3  ;;  %v379_v46 = vsub.s32 7, %v2432_v14 }
 0x167   :  { %v2671_v47 = vpop.f32.mrf.mxu1 }
 0x169   :  { %v2673_v48 = vpop.f32.mrf.mxu1 }
 0x16c   :  { %1563 = vrot.lane.b32.xlu0 %v2601_v20, %s2296_s28 }
 0x189   :  { %v937_v49 = vpop.f32.mrf.mxu1 }
 0x18a   :  { %v962_v16 = vadd.f32 %v1919_v7, %v937_v49 }
 0x18b   :  { %v2037_v50 = vpop.f32.mrf.mxu1 }
 0x18c   :  { %v2669_v43 = vpop.f32.mrf.mxu0 }
 0x18e   :  { %v750_v45 = vpop.f32.mrf.mxu0 }
 0x18f   :  { %v376_v45 = vrot.slane %v2678_v12, %v375_v41  ;;  %v1929_v41 = vld [vmem:[%s2998_s14] ss:$0 sm:$0xff] }
 0x191   :  { %v678_v54 = vadd.f32 %v2671_v47, %v376_v45 }
 0x1ac   :  { %v866_v53 = vpop.f32.mrf.mxu0 }
 0x1ad   :  { %v941_v55 = vadd.f32 %v866_v53, %v465_v52  ;;  %v1922_v53 = vld [vmem:[%s2991_s7 + $0x1] ss:$0 sm:$0xff] }
 0x1ae   :  { %v868_v57 = vpop.f32.mrf.mxu0 }
 0x1af   :  { %v1917_v56 = vmul.f32 -1.442695, %v941_v55  ;;  %v948_v58 = vadd.f32 %v868_v57, %v467_v24  ;;  %v1157_v63 = vpop.f32.mrf.mxu1  ;;  %v380_v55 = vrot.slane %v2678_v12, %v379_v46  ;;  %v372_v57 = vrot.slane %v2678_v12, %v371_v51 }
 0x1b0   :  { %v1182_v14 = vadd.f32 %v1922_v53, %v1157_v63 }
 0x1b1   :  { %2174 = vpow2.f32 %v1917_v56  ;;  %v1918_v59 = vmul.f32 -1.442695, %v948_v58  ;;  %v2072_v1 = vpop.f32.mrf.mxu1  ;;  %v680_v47 = vadd.f32 %v2673_v48, %v380_v55 }
 0x1b3   :  { %2176 = vpow2.f32 %v1918_v59 }
 0x1be   :  { %v2175_v60 = vpop.eup %2174 }
 0x1bf   :  { %v945_v61 = vadd.f32 1.0, %v2175_v60 }
 0x1c0   :  { %v2177_v5 = vpop.eup %2176 }
 0x1c1   :  { %2178 = vrcp.f32 %v945_v61  ;;  %v952_v15 = vadd.f32 1.0, %v2177_v5  ;;  %v609_v61 = vadd.f32 %v2667_v42, %v372_v57 }
 0x1c3   :  { %2180 = vrcp.f32 %v952_v15 }
 0x1cc   :  { %v1086_v17 = vpop.f32.mrf.mxu0 }
 0x1cd   :  { %v1161_v22 = vadd.f32 %v1086_v17, %v538_v13 }
 0x1ce   :  { %v2179_v23 = vpop.eup %2178  ;;  %v1088_v28 = vpop.f32.mrf.mxu0 }
 0x1cf   :  { %v963_v25 = vmul.f32 %v2179_v23, %v962_v16  ;;  %v1920_v27 = vmul.f32 -1.442695, %v1161_v22  ;;  %v1168_v31 = vadd.f32 %v1088_v28, %v607_v29  ;;  %v1925_v16 = vld [vmem:[%s2991_s7 + $0x2] ss:$0 sm:$0xff] }
 0x1d0   :  { %v2181_v35 = vpop.eup %2180 }
 0x1d1   :  { %v964_v30 = vadd.f32 %v963_v25, %v536_v19  ;;  %2182 = vpow2.f32 %v1920_v27  ;;  %v1921_v33 = vmul.f32 -1.442695, %v1168_v31  ;;  %v966_v36 = vsub.f32 1.0, %v2181_v35  ;;  %v1911_v19 = vld [vmem:[%s2990_s6 + $0x8] ss:$0 sm:$0xff]  ;;  %s2297_s6 = smov 32  }
 0x1d2   :  { %v968_v39 = vmul.f32 %v2181_v35, %v2513_v10 }
 0x1d3   :  { %2184 = vtanh.f32 %v964_v30  ;;  %v1377_v49 = vpop.f32.mrf.mxu1 }
 0x1d4   :  { %2186 = vpow2.f32 %v1921_v33  ;;  %v1402_v17 = vadd.f32 %v1925_v16, %v1377_v49  ;;  %v1761_v16 = vld [vmem:[%s2999_s15 + $0xb8] sm:$0xff] }
 0x1d5   :  { %v2107_v10 = vpop.f32.mrf.mxu1 }
 0x1de   :  { %v2183_v26 = vpop.eup %2182 }
 0x1df   :  { %v1590_v34 = vpop.xlane.xlu0 %1589  ;;  %v1165_v37 = vadd.f32 1.0, %v2183_v26 }
 0x1e0   :  { %2188 = vrcp.f32 %v1590_v34  ;;  %v2185_v38 = vpop.eup %2184 }
 0x1e1   :  { %v967_v44 = vmul.f32 %v2185_v38, %v966_v36  ;;  %2190 = vrcp.f32 %v1165_v37  ;;  %v2187_v50 = vpop.eup %2186 }
 0x1e2   :  { %v1172_v24 = vadd.f32 1.0, %v2187_v50 }
 0x1e3   :  { %v2695_v40 = vadd.f32 %v968_v39, %v967_v44  ;;  %v1564_v36 = vpop.permute.xlu0 %1563  ;;  %v1926_v39 = vld [vmem:[%s2993_s9] ss:$0 sm:$0xff] }
 0x1e4   :  { %2192 = vrcp.f32 %v1172_v24  ;;  %v1566_v37 = vadd.f32 %v1564_v36, %v2467_v8  ;;  %v1745_v36 = vld [vmem:[%s2999_s15 + $0x38] sm:$0xff] }
 0x1e5   :  { %970 = vst [vmem:[%s3003_s19] sm:$0xff] %v2695_v40 }
 0x1ec   :  { %v1306_v58 = vpop.f32.mrf.mxu0 }
 0x1ed   :  { %v2189_v52 = vpop.eup %2188  ;;  %v1381_v59 = vadd.f32 %v1306_v58, %v678_v54 }
 0x1ee   :  { %v2710_v56 = vmul.f32 %v2189_v52, %v2578_v11  ;;  %v2191_v60 = vpop.eup %2190  ;;  %v1308_v11 = vpop.f32.mrf.mxu0 }
 0x1ef   :  { %v1183_v12 = vmul.f32 %v2191_v60, %v1182_v14  ;;  %v1923_v62 = vmul.f32 -1.442695, %v1381_v59  ;;  %v1388_v2 = vadd.f32 %v1308_v11, %v680_v47 }
 0x1f0   :  { %2152 = vmatmul.mubr.msk.f32.vlgmr.msra.gmra.mxu1 %vm1550_vm1, %v2710_v56  ;;  %1702 = vst.msk [vmem:[%s3001_s17] sm:$0xff] %vm1550_vm1, %v2710_v56 }
 0x1f1   :  { %v1184_v1 = vadd.f32 %v1183_v12, %v609_v61  ;;  %2194 = vpow2.f32 %v1923_v62  ;;  %v1924_v3 = vmul.f32 -1.442695, %v1388_v2  ;;  %v2193_v5 = vpop.eup %2192 }
 0x1f2   :  { %v1186_v7 = vsub.f32 1.0, %v2193_v5  ;;  %v1188_v13 = vmul.f32 %v2193_v5, %v2539_v4  ;;  %v749_v4 = vadd.f32 %v1911_v19, %v2669_v43  ;;  %v1758_v19 = vld [vmem:[%s2999_s15 + $0xa0] sm:$0xff] }
 0x1f3   :  { %2196 = vtanh.f32 %v1184_v1 }
 0x1f4   :  { %2198 = vpow2.f32 %v1924_v3 }
 0x1fe   :  { %v2195_v6 = vpop.eup %2194 }
 0x1ff   :  { %v1385_v63 = vadd.f32 1.0, %v2195_v6  ;;  %v1769_v6 = vld [vmem:[%s2999_s15 + $0xf8] sm:$0xff] }
 0x200   :  { %v2197_v9 = vpop.eup %2196  ;;  %1814 = vmatprep.subr.mxu1 %v1769_v6  ;;  %v1781_v6 = vld [vmem:[%s2999_s15 + $0x158] sm:$0xff] }
 0x201   :  { %2200 = vrcp.f32 %v1385_v63  ;;  %v1187_v48 = vmul.f32 %v2197_v9, %v1186_v7  ;;  %v2199_v42 = vpop.eup %2198  ;;  %v1768_v63 = vld [vmem:[%s2999_s15 + $0xf0] sm:$0xff]  ;;  %v1767_v7 = vld [vmem:[%s2999_s15 + $0xe8] sm:$0xff]  ;;  %v1766_v9 = vld [vmem:[%s2999_s15 + $0xe0] sm:$0xff] }
 0x202   :  { %v1392_v18 = vadd.f32 1.0, %v2199_v42  ;;  %1815 = vmatpush1.msra.mxu1 %v1768_v63  ;;  %v1762_v42 = vld [vmem:[%s2999_s15 + $0xc0] sm:$0xff]  ;;  %v1780_v63 = vld [vmem:[%s2999_s15 + $0x150] sm:$0xff] }
 0x203   :  { %v1189_v15 = vadd.f32 %v1188_v13, %v1187_v48  ;;  %v1765_v48 = vld [vmem:[%s2999_s15 + $0xd8] sm:$0xff]  ;;  %1816 = vmatprep.subr.mxu1 %v1767_v7  ;;  %v1764_v13 = vld [vmem:[%s2999_s15 + $0xd0] sm:$0xff]  ;;  %v1779_v7 = vld [vmem:[%s2999_s15 + $0x148] sm:$0xff] }
 0x204   :  { %2202 = vrcp.f32 %v1392_v18  ;;  %1817 = vmatpush1.msra.mxu1 %v1766_v9  ;;  %v1760_v18 = vld [vmem:[%s2999_s15 + $0xb0] sm:$0xff]  ;;  %v1778_v9 = vld [vmem:[%s2999_s15 + $0x140] sm:$0xff] }
 0x205   :  { %1190 = vst [vmem:[%s3003_s19 + $0x8] sm:$0xff] %v1189_v15  ;;  %2141 = vmatmul.mubr.f32.vlgmr.msra.gmra.mxu0 %v1189_v15  ;;  %v1763_v15 = vld [vmem:[%s2999_s15 + $0xc8] sm:$0xff]  ;;  %1818 = vmatprep.subr.mxu1 %v1765_v48  ;;  %v1777_v48 = vld [vmem:[%s2999_s15 + $0x138] sm:$0xff] }
 0x206   :  { %1819 = vmatpush1.msra.mxu1 %v1764_v13  ;;  %v1776_v13 = vld [vmem:[%s2999_s15 + $0x130] sm:$0xff] }
 0x207   :  { %1820 = vmatprep.subr.mxu1 %v1763_v15  ;;  %v1775_v15 = vld [vmem:[%s2999_s15 + $0x128] sm:$0xff] }
 0x208   :  { %1821 = vmatpush1.msra.mxu1 %v1762_v42  ;;  %v1774_v42 = vld [vmem:[%s2999_s15 + $0x120] sm:$0xff] }
 0x209   :  { %1822 = vmatprep.subr.mxu1 %v1761_v16  ;;  %v1773_v16 = vld [vmem:[%s2999_s15 + $0x118] sm:$0xff] }
 0x20a   :  { %1823 = vmatpush1.msra.mxu1 %v1760_v18  ;;  %v1772_v18 = vld [vmem:[%s2999_s15 + $0x110] sm:$0xff] }
 0x20e   :  { %v2201_v22 = vpop.eup %2200 }
 0x20f   :  { %v1403_v23 = vmul.f32 %v2201_v22, %v1402_v17  ;;  %v1759_v17 = vld [vmem:[%s2999_s15 + $0xa8] sm:$0xff] }
 0x210   :  { %1824 = vmatprep.subr.mxu1 %v1759_v17  ;;  %v1771_v17 = vld [vmem:[%s2999_s15 + $0x108] sm:$0xff] }
 0x211   :  { %v1404_v25 = vadd.f32 %v1403_v23, %v749_v4  ;;  %v2203_v27 = vpop.eup %2202  ;;  %v1757_v4 = vld [vmem:[%s2999_s15 + $0x98] sm:$0xff]  ;;  %1825 = vmatpush1.msra.mxu1 %v1758_v19 }
 0x212   :  { %v1406_v28 = vsub.f32 1.0, %v2203_v27  ;;  %v1408_v29 = vmul.f32 %v2203_v27, %v2565_v0  ;;  %v1571_v0 = vmul.f32 10.0, %v1566_v37  ;;  %v1755_v27 = vld [vmem:[%s2999_s15 + $0x88] sm:$0xff]  ;;  %1826 = vmatprep.subr.mxu1 %v1757_v4  ;;  %v1744_v37 = vld [vmem:[%s2999_s15 + $0x30] sm:$0xff]  ;;  %v1770_v4 = vld [vmem:[%s2999_s15 + $0x100] sm:$0xff] }
 0x213   :  { %2204 = vtanh.f32 %v1404_v25  ;;  %v1756_v25 = vld [vmem:[%s2999_s15 + $0x90] sm:$0xff] }
 0x214   :  { %v1573_v38 = vsel %vm1550_vm1, %v1571_v0, -inf  ;;  %1827 = vmatpush1.msra.mxu1 %v1756_v25 }
 0x215   :  { %1828 = vmatprep.subr.mxu1 %v1755_v27 }
 0x220   :  { %v2205_v30 = vpop.eup %2204 }
 0x221   :  { %v1407_v31 = vmul.f32 %v2205_v30, %v1406_v28  ;;  %v1754_v28 = vld [vmem:[%s2999_s15 + $0x80] sm:$0xff]  ;;  %v1752_v30 = vld [vmem:[%s2999_s15 + $0x70] sm:$0xff] }
 0x222   :  { %1829 = vmatpush1.msra.mxu1 %v1754_v28 }
 0x223   :  { %v1409_v33 = vadd.f32 %v1408_v29, %v1407_v31  ;;  %v1753_v29 = vld [vmem:[%s2999_s15 + $0x78] sm:$0xff]  ;;  %v1751_v31 = vld [vmem:[%s2999_s15 + $0x68] sm:$0xff] }
 0x224   :  { %1830 = vmatprep.subr.mxu1 %v1753_v29  ;;  %v1802_v29 = vld [vmem:[%s3000_s16] sm:$0x3] }
 0x225   :  { %1410 = vst [vmem:[%s3003_s19 + $0x10] sm:$0xff] %v1409_v33  ;;  %v1750_v33 = vld [vmem:[%s2999_s15 + $0x60] sm:$0xff]  ;;  %1831 = vmatpush1.msra.mxu1 %v1752_v30  ;;  %v1807_v30 = vrot.slane %v1802_v29, %v2439_v21 }
 0x226   :  { %1832 = vmatprep.subr.mxu1 %v1751_v31  ;;  %v1811_v31 = vrot.slane %v1802_v29, %v2448_v32 }
 0x227   :  { %1833 = vmatpush1.msra.mxu1 %v1750_v33 }
 0x2b0   :  { %v1668_v34 = vpop.f32.mrf.mxu1 }
 0x2b1   :  { %1675 = vperm.xlu1 %2170, %v1668_v34   ;;  %v1749_v34 = vld [vmem:[%s2999_s15 + $0x58] sm:$0xff] }
 0x2b2   :  { %v2153_v35 = vpop.f32.mrf.mxu1  ;;  %1834 = vmatprep.subr.mxu1 %v1749_v34 }
 0x2b3   :  { %v1748_v35 = vld [vmem:[%s2999_s15 + $0x50] sm:$0xff] }
 0x2b4   :  { %1835 = vmatpush1.msra.mxu1 %v1748_v35 }
 0x2b5   :  { %1686 = vrot.lane.b32.xlu1 %v2601_v20, %s2297_s6 }
 0x2c5   :  { %v1500_v43 = vpop.f32.mrf.mxu0 }
 0x2c6   :  { %v1501_v45 = vadd.f32 %v1926_v39, %v1500_v43  ;;  %v1747_v43 = vld [vmem:[%s2999_s15 + $0x48] sm:$0xff]  ;;  %v1741_v39 = vld [vmem:[%s2999_s15 + $0x18] sm:$0xff] }
 0x2c7   :  { %v2142_v26 = vpop.f32.mrf.mxu0  ;;  %1836 = vmatprep.subr.mxu1 %v1747_v43 }
 0x2c8   :  { %v1548_v51 = vadd.f32 %v2601_v20, %v1501_v45  ;;  %v1746_v26 = vld [vmem:[%s2999_s15 + $0x40] sm:$0xff] }
 0x2c9   :  { %1837 = vmatpush1.msra.mxu1 %v1746_v26 }
 0x2ca   :  { %v1549_v54 = vmul.f32 10.0, %v1548_v51  ;;  %1838 = vmatprep.subr.mxu1 %v1745_v36  ;;  %v1799_v51 = vld [vmem:[%s2999_s15 + $0x1e8] sm:$0xff] }
 0x2cb   :  { %1839 = vmatpush1.msra.mxu1 %v1744_v37 }
 0x2cc   :  { %v1551_v55 = vsel %vm1550_vm1, %v1549_v54, -inf }
 0x2d9   :  { %1574 = vmax.xlane.f32.xlu1 %v1573_v38  ;;  %v1742_v38 = vld [vmem:[%s2999_s15 + $0x20] sm:$0xff] }
 0x32c   :  { %v1676_v44 = vpop.permute.xlu1 %1675 }
 0x32d   :  { %v1684_v46 = vadd.f32 %v1929_v41, %v1676_v44  ;;  %v1740_v41 = vld [vmem:[%s2999_s15 + $0x10] sm:$0xff]  ;;  %v1739_v44 = vld [vmem:[%s2999_s15 + $0x8] sm:$0xff] }
 0x32f   :  { %v2747_v49 = vadd.f32 %v1684_v46, %v1501_v45  ;;  %v1738_v45 = vld [vmem:[%s2999_s15] sm:$0xff]  ;;  %v1801_v46 = vld [vmem:[%s2999_s15 + $0x1f8] sm:$0xff] }
 0x330   :  { %v1687_v50 = vpop.permute.xlu1 %1686 }
 0x331   :  { %v1689_v10 = vadd.f32 %v1687_v50, %v2747_v49  ;;  %v1800_v50 = vld [vmem:[%s2999_s15 + $0x1f0] sm:$0xff] }
 0x333   :  { %v1690_v52 = vmul.f32 10.0, %v1689_v10  ;;  %v1798_v10 = vld [vmem:[%s2999_s15 + $0x1e0] sm:$0xff] }
 0x335   :  { %v1691_v53 = vsel %vm1550_vm1, %v1690_v52, -inf }
 0x336   :  { %1692 = vmax.xlane.f32.xlu0 %v1691_v53  ;;  %v1796_v53 = vld [vmem:[%s2999_s15 + $0x1d0] sm:$0xff] }
 0x33a   :  { %1552 = vmax.xlane.f32.xlu0 %v1551_v55  ;;  %v1794_v55 = vld [vmem:[%s2999_s15 + $0x1c0] sm:$0xff] }
 0x362   :  { %v1575_v57 = vpop.xlane.xlu1 %1574 }
 0x363   :  { %v1579_v24 = vsub.f32 %v1571_v0, %v1575_v57  ;;  %v1743_v0 = vld [vmem:[%s2999_s15 + $0x28] sm:$0xff]  ;;  %v1793_v57 = vld [vmem:[%s2999_s15 + $0x1b8] sm:$0xff] }
 0x364   :  { %1840 = vmatprep.subr.mxu1 %v1743_v0 }
 0x365   :  { %v1581_v14 = vmul.f32 1.442695, %v1579_v24  ;;  %1841 = vmatpush1.msra.mxu1 %v1742_v38  ;;  %v1792_v24 = vld [vmem:[%s2999_s15 + $0x1b0] sm:$0xff] }
 0x366   :  { %1842 = vmatprep.subr.mxu1 %v1741_v39 }
 0x367   :  { %2206 = vpow2.f32 %v1581_v14  ;;  %1843 = vmatpush1.msra.mxu1 %v1740_v41  ;;  %v1791_v14 = vld [vmem:[%s2999_s15 + $0x1a8] sm:$0xff] }
 0x368   :  { %1844 = vmatprep.subr.mxu1 %v1739_v44 }
 0x369   :  { %1845 = vmatpush1.msra.mxu1 %v1738_v45 }
 0x36a   :  { %1846 = vmatprep.subr.mxu1 %v1801_v46 }
 0x36b   :  { %1847 = vmatpush2.msra.mxu1 %v1800_v50 }
 0x36c   :  { %1848 = vmatprep.subr.mxu1 %v1799_v51 }
 0x36d   :  { %1849 = vmatpush2.msra.mxu1 %v1798_v10 }
 0x374   :  { %v2207_v58 = vpop.eup %2206 }
 0x375   :  { %v1585_v47 = vsel %vm1550_vm1, %v2207_v58, 0.0 }
 0x376   :  { %1586 = vadd.xlane.f32.xlu1 %v1585_v47  ;;  %v1789_v47 = vld [vmem:[%s2999_s15 + $0x198] sm:$0xff] }
 0x3bf   :  { %v1693_v59 = vpop.xlane.xlu0 %1692 }
 0x3c0   :  { %v1694_v20 = vsub.f32 %v1690_v52, %v1693_v59  ;;  %v1797_v52 = vld [vmem:[%s2999_s15 + $0x1d8] sm:$0xff]  ;;  %v1788_v59 = vld [vmem:[%s2999_s15 + $0x190] sm:$0xff] }
 0x3c1   :  { %1850 = vmatprep.subr.mxu1 %v1797_v52 }
 0x3c2   :  { %v1695_v60 = vmul.f32 1.442695, %v1694_v20  ;;  %1851 = vmatpush2.msra.mxu1 %v1796_v53  ;;  %v1787_v20 = vld [vmem:[%s2999_s15 + $0x188] sm:$0xff] }
 0x3c3   :  { %v1553_v11 = vpop.xlane.xlu0 %1552 }
 0x3c4   :  { %2208 = vpow2.f32 %v1695_v60  ;;  %v1554_v61 = vsub.f32 %v1549_v54, %v1553_v11  ;;  %v1795_v54 = vld [vmem:[%s2999_s15 + $0x1c8] sm:$0xff]  ;;  %v1786_v60 = vld [vmem:[%s2999_s15 + $0x180] sm:$0xff]  ;;  %v1785_v11 = vld [vmem:[%s2999_s15 + $0x178] sm:$0xff] }
 0x3c5   :  { %1852 = vmatprep.subr.mxu1 %v1795_v54 }
 0x3c6   :  { %v1555_v12 = vmul.f32 1.442695, %v1554_v61  ;;  %1853 = vmatpush2.msra.mxu1 %v1794_v55  ;;  %v1784_v61 = vld [vmem:[%s2999_s15 + $0x170] sm:$0xff] }
 0x3c7   :  { %1854 = vmatprep.subr.mxu1 %v1793_v57 }
 0x3c8   :  { %2210 = vpow2.f32 %v1555_v12  ;;  %1855 = vmatpush2.msra.mxu1 %v1792_v24  ;;  %v1783_v12 = vld [vmem:[%s2999_s15 + $0x168] sm:$0xff] }
 0x3c9   :  { %1856 = vmatprep.subr.mxu1 %v1791_v14 }
 0x3d1   :  { %v2754_v62 = vpop.eup %2208 }
 0x3d2   :  { %v1697_v1 = vsel %vm1550_vm1, %v2754_v62, 0.0 }
 0x3d3   :  { %1698 = vadd.xlane.f32.xlu0 %v1697_v1 }
 0x3d5   :  { %v2758_v2 = vpop.eup %2210 }
 0x3d6   :  { %v1557_v3 = vsel %vm1550_vm1, %v2758_v2, 0.0 }
 0x3d7   :  { %1558 = vadd.xlane.f32.xlu1 %v1557_v3 }
 0x3ff   :  { %v1587_v5 = vpop.xlane.xlu1 %1586 }
 0x400   :  { %2212 = vrcp.f32 %v1587_v5  ;;  %v1782_v5 = vld [vmem:[%s2999_s15 + $0x160] sm:$0xff] }
 0x40d   :  { %v2213_v22 = vpop.eup %2212 }
 0x40e   :  { %v1592_v23 = vmul.f32 %v2213_v22, %v2207_v58  ;;  %v1790_v58 = vld [vmem:[%s2999_s15 + $0x1a0] sm:$0xff] }
 0x40f   :  { %1857 = vmatpush2.msra.mxu1 %v1790_v58 }
 0x410   :  { %1724 = vrot.lane.b32.xlu0 %v1592_v23, %s2297_s6  ;;  %1858 = vmatprep.subr.mxu1 %v1789_v47 }
 0x411   :  { %1859 = vmatpush2.msra.mxu1 %v1788_v59 }
 0x412   :  { %1860 = vmatprep.subr.mxu1 %v1787_v20 }
 0x413   :  { %1861 = vmatpush2.msra.mxu1 %v1786_v60 }
 0x414   :  { %1862 = vmatprep.subr.mxu1 %v1785_v11 }
 0x415   :  { %1863 = vmatpush2.msra.mxu1 %v1784_v61 }
 0x416   :  { %1864 = vmatprep.subr.mxu1 %v1783_v12 }
 0x417   :  { %1865 = vmatpush2.msra.mxu1 %v1782_v5 }
 0x418   :  { %1866 = vmatprep.subr.mxu1 %v1781_v6 }
 0x419   :  { %1867 = vmatpush2.msra.mxu1 %v1780_v63 }
 0x41a   :  { %1868 = vmatprep.subr.mxu1 %v1779_v7 }
 0x41b   :  { %1869 = vmatpush2.msra.mxu1 %v1778_v9 }
 0x41c   :  { %1870 = vmatprep.subr.mxu1 %v1777_v48 }
 0x41d   :  { %1871 = vmatpush2.msra.mxu1 %v1776_v13 }
 0x41e   :  { %1872 = vmatprep.subr.mxu1 %v1775_v15 }
 0x41f   :  { %1873 = vmatpush2.msra.mxu1 %v1774_v42 }
 0x420   :  { %1874 = vmatprep.subr.mxu1 %v1773_v16 }
 0x421   :  { %1875 = vmatpush2.msra.mxu1 %v1772_v18 }
 0x422   :  { %1876 = vmatprep.subr.mxu1 %v1771_v17 }
 0x423   :  { %1877 = vmatpush2.msra.mxu1 %v1770_v4 }
 0x45c   :  { %v1699_v1 = vpop.xlane.xlu0 %1698 }
 0x45d   :  { %2214 = vrcp.f32 %v1699_v1 }
 0x460   :  { %v1559_v3 = vpop.xlane.xlu1 %1558 }
 0x461   :  { %2216 = vrcp.f32 %v1559_v3 }
 0x46a   :  { %v2215_v19 = vpop.eup %2214 }
 0x46b   :  { %v1701_v22 = vmul.f32 %v2215_v19, %v2754_v62 }
 0x46d   :  { %1704 = vrot.lane.b32.xlu0 %v1701_v22, %s2297_s6  ;;  %1728 = vrot.lane.b32.xlu1 %v1701_v22, %s2293_s21 }
 0x46e   :  { %v2217_v23 = vpop.eup %2216 }
 0x46f   :  { %v1561_v25 = vmul.f32 %v2217_v23, %v2758_v2 }
 0x471   :  { %1716 = vrot.lane.b32.xlu0 %v2747_v49, %s2296_s28  ;;  %1732 = vrot.lane.b32.xlu1 %v2710_v56, %s2296_s28  ;;  %1722 = vst.msk [vmem:[#allocation2 + $0x8] sm:$0xff] %vm1550_vm1, %v1561_v25 }
 0x475   :  { %1710 = vrot.lane.b32.xlu1 %v2467_v8, %s2293_s21 }
 0x482   :  { %v1725_v62 = vpop.permute.xlu0 %1724 }
 0x483   :  { %1727 = vst.msk [vmem:[#allocation2 + $0x8] sm:$0xff] %vm1707_vm3, %v1725_v62 }
 0x4df   :  { %v1729_v27 = vpop.permute.xlu1 %1728  ;;  %v1705_v28 = vpop.permute.xlu0 %1704 }
 0x4e0   :  { %1731 = vst.msk [vmem:[#allocation2 + $0x8] sm:$0xff] %vm1713_vm4, %v1729_v27 }
 0x4e1   :  { %1708 = vst.msk [vmem:[%s3001_s17] sm:$0xff] %vm1707_vm3, %v1705_v28 }
 0x4e3   :  { %v1733_v49 = vpop.permute.xlu1 %1732  ;;  %v1717_v2 = vpop.permute.xlu0 %1716 }
 0x4e4   :  { %1735 = vst.msk [vmem:[#allocation2 + $0x8] sm:$0xff] %vm1719_vm5, %v1733_v49 }
 0x4e7   :  { %v1711_v56 = vpop.permute.xlu1 %1710 }
 0x4e8   :  { %1714 = vst.msk [vmem:[%s3001_s17] sm:$0xff] %vm1713_vm4, %v1711_v56 }
 0x4e9   :  { %1720 = vst.msk [vmem:[%s3001_s17] sm:$0xff] %vm1719_vm5, %v1717_v2  ;;  %s2259_s17 = scalar_lea.vmem %s1896_s0, 256 }
 0x4ea   :  { %p2260_p10 = scmp.ne.s32.totalorder %s1896_s0, %s2259_s17  ;;  %p2265_p12 = scmp.lt.s32.totalorder %s2259_s17, %s2259_s17 }
 0x4eb   :  { %v1737_v8 = vld [vmem:[#allocation2 + $0x8] sm:$0xff] }
 0x4ec   :  { %1878 = vmatprep.mubr.f32.mxu1 %v1737_v8  ;;  %p2266_p13 = por %p2265_p12, %p2264_p11 }
 0x4ed   :  { %1879 = vmatmul.mubr.f32.vlgmr.msra.gmra.mxu1 %v2695_v40 }
 0x4ee   :  { %p2267_p0 = pnand %p2266_p13, %p2260_p10 }
 0x5ad   :  { %v1880_v33 = vpop.f32.mrf.mxu1 }
 0x5ae   :  { %v1881_v34 = vadd.f32 %v1880_v33, %v1807_v30 }
 0x5af   :  { %v1882_v35 = vpop.f32.mrf.mxu1 }
 0x5b0   :  { %1885 = vst [vmem:[#allocation8] sm:$0xff] %v1881_v34  ;;  %v1883_v43 = vadd.f32 %v1882_v35, %v1811_v31 }
 0x5b2   :  { %1886 = vst [vmem:[#allocation8 + $0x8] sm:$0xff] %v1883_v43 }
 0x5b3   :  { %2270 = shalt.err (!%p2267_p0)
}
 0x5b4   :  { %1898 = dma.vmem_to_hbm [thread:$0]  %s1896_s0, 256, %s3002_s18, [#allocation5]  }
 0x5b5   :  { %2283 = dma.done.wait [#allocation5], 256  }
 0x5b6   :  { %2284 = vsyncadd [#allocation5], 4294967040 }
 0x5b7   :  { %1908 = vsyncpa [#allocation4], 1 }
 0x5b8   :  { %1909 = vsyncpa [#allocation7], 1 }
 0x5b9   :  { %1910 = vsyncpa [#allocation5], 1 }

</bundles_post_ra>
